<compile_context>
chip_gen: v7x
topology: tpu7x:2x2x1
jax: 0.10.0
libtpu: 0.0.40
codegen_flags: <defaults>
</compile_context>

<pallas_src>
import functools

import jax
import jax.numpy as jnp
import numpy as np
from jax.experimental import pallas as pl
from jax.experimental.pallas import tpu as pltpu


# ---------------------------------------------------------------------------
# Kernel 1: sequential maxout-LSTM recurrence (single invocation, fori_loop)
# ---------------------------------------------------------------------------
def _lstm_recurrence_kernel(pg_ref, wh_ref, h_all_ref, *, lstm_size, seq_len):
    """pg_ref: (T, B, 5H) pre-gates; wh_ref: (H, 5H); h_all_ref: (T, B, H)."""
    H = lstm_size
    B = pg_ref.shape[1]
    wh = wh_ref[...]                                   # hoisted: loaded once

    def step(t, carry):
        h_prev, c_prev = carry
        gates = pg_ref[t] + jnp.dot(h_prev, wh, preferred_element_type=jnp.float32)
        in_gate = jax.nn.sigmoid(gates[:, 0:H])
        forget_gate = jax.nn.sigmoid(gates[:, H:2 * H])
        out_gate = jax.nn.sigmoid(gates[:, 2 * H:3 * H])
        in_transform = jnp.maximum(gates[:, 3 * H:4 * H], gates[:, 4 * H:5 * H])
        c_new = forget_gate * c_prev + in_gate * in_transform
        h_new = out_gate * jnp.tanh(c_new)
        h_all_ref[t] = h_new
        return (h_new, c_new)

    zeros = jnp.zeros((B, H), jnp.float32)
    jax.lax.fori_loop(0, seq_len, step, (zeros, zeros), unroll=(seq_len <= 16))


# ---------------------------------------------------------------------------
# Kernel 2: logit projection + log_softmax (embarrassingly parallel over rows)
# ---------------------------------------------------------------------------
def _logit_logsoftmax_kernel(h_ref, wl_ref, bl_ref, out_ref):
    """h_ref: (rows, H); wl_ref: (H, V); bl_ref: (1, V); out_ref: (rows, V)."""
    logits = jnp.dot(h_ref[...], wl_ref[...],
                     preferred_element_type=jnp.float32) + bl_ref[...]
    m = jnp.max(logits, axis=-1, keepdims=True)
    shifted = logits - m
    lse = jnp.log(jnp.sum(jnp.exp(shifted), axis=-1, keepdims=True))
    out_ref[...] = (shifted - lse).astype(out_ref.dtype)


# ---------------------------------------------------------------------------
# Wrapper
# ---------------------------------------------------------------------------
def encoder_decoder_forward(fc_feats, seq, params, *, vmem_limit_bytes=64 * 1024 * 1024):
    """Forward pass of EncoderDecoder. Returns (B, T-1, V) log-probs."""
    B = fc_feats.shape[0]
    T = seq.shape[1]
    H = params["lstm_w_h2h"].shape[0]          # lstm_size
    V = params["logit_w"].shape[1]             # vocab_size

    # ---- glue: per-step inputs x_t (T, B, E) ----
    x0 = fc_feats @ params["img_embed_w"] + params["img_embed_b"]          # (B, E)   i == 0
    x_rest = params["embed_table"][seq[:, :T - 1]]                         # (B, T-1, E)
    x = jnp.concatenate([x0[:, None, :], x_rest], axis=1)                  # (B, T, E)
    x = jnp.transpose(x, (1, 0, 2)).astype(jnp.float32)                    # (T, B, E)

    # ---- hoisted i2h projection: one big (T*B, E) x (E, 5H) matmul ----
    bias = (params["lstm_b_i2h"] + params["lstm_b_h2h"]).astype(jnp.float32)
    pre_gates = (x.reshape(T * B, -1) @ params["lstm_w_i2h"].astype(jnp.float32))
    pre_gates = pre_gates.reshape(T, B, 5 * H) + bias                      # (T, B, 5H)

    # ---- Pallas kernel 1: sequential recurrence, emits all hidden states ----
    h_all = pl.pallas_call(
        functools.partial(_lstm_recurrence_kernel, lstm_size=H, seq_len=T),
        out_shape=jax.ShapeDtypeStruct((T, B, H), jnp.float32),
        in_specs=[
            pl.BlockSpec(memory_space=pltpu.MemorySpace.VMEM),   # pre_gates (whole)
            pl.BlockSpec(memory_space=pltpu.MemorySpace.VMEM),   # W_h2h (whole)
        ],
        out_specs=pl.BlockSpec(memory_space=pltpu.MemorySpace.VMEM),
        compiler_params=pltpu.CompilerParams(vmem_limit_bytes=vmem_limit_bytes),
    )(pre_gates, params["lstm_w_h2h"].astype(jnp.float32))

    # ---- Pallas kernel 2: logits + log_softmax for t = 1..T-1 (t=0 discarded) ----
    R = (T - 1) * B
    h_dec = h_all[1:].reshape(R, H)                                        # rows ordered (t, b)

    # biggest row tile (multiple of 8 or the full extent) that divides R
    candidates = [c for c in (R, 1024, 512, 256, 128, 64, 32, 16, 8) if c <= R and R % c == 0]
    row_tile = max(candidates) if candidates else R

    logp = pl.pallas_call(
        _logit_logsoftmax_kernel,
        out_shape=jax.ShapeDtypeStruct((R, V), jnp.float32),
        grid_spec=pltpu.PrefetchScalarGridSpec(
            num_scalar_prefetch=0,
            grid=(R // row_tile,),
            in_specs=[
                pl.BlockSpec((row_tile, H), lambda r: (r, 0)),   # hidden-state rows
                pl.BlockSpec((H, V), lambda r: (0, 0)),          # logit weight
                pl.BlockSpec((1, V), lambda r: (0, 0)),          # logit bias
            ],
            out_specs=pl.BlockSpec((row_tile, V), lambda r: (r, 0)),
        ),
        compiler_params=pltpu.CompilerParams(
            dimension_semantics=("parallel",),
            vmem_limit_bytes=vmem_limit_bytes,
        ),
    )(h_dec,
      params["logit_w"].astype(jnp.float32),
      params["logit_b"][None, :].astype(jnp.float32))

    # (R, V) -> (T-1, B, V) -> (B, T-1, V)  (matches torch.cat(..., dim=1))
    return jnp.transpose(logp.reshape(T - 1, B, V), (1, 0, 2))


# ---------------------------------------------------------------------------
# pure-JAX reference (mirrors the PyTorch forward) for a correctness check
# ---------------------------------------------------------------------------
def reference_forward(fc_feats, seq, params):
    B = fc_feats.shape[0]
    T = seq.shape[1]
    H = params["lstm_w_h2h"].shape[0]
    h = jnp.zeros((B, H), jnp.float32)
    c = jnp.zeros((B, H), jnp.float32)
    outs = []
    for i in range(T):
        if i == 0:
            xt = fc_feats @ params["img_embed_w"] + params["img_embed_b"]
        else:
            xt = params["embed_table"][seq[:, i - 1]]
        gates = xt @ params["lstm_w_i2h"] + params["lstm_b_i2h"] \
            + h @ params["lstm_w_h2h"] + params["lstm_b_h2h"]
        ig = jax.nn.sigmoid(gates[:, 0:H])
        fg = jax.nn.sigmoid(gates[:, H:2 * H])
        og = jax.nn.sigmoid(gates[:, 2 * H:3 * H])
        gt = jnp.maximum(gates[:, 3 * H:4 * H], gates[:, 4 * H:5 * H])
        c = fg * c + ig * gt
        h = og * jnp.tanh(c)
        if i > 0:
            logits = h @ params["logit_w"] + params["logit_b"]
            outs.append(jax.nn.log_softmax(logits, axis=-1))
    return jnp.stack(outs, axis=1)


def make_params(key, fc_feat_size, input_encoding_size, lstm_size, vocab_size):
    ks = jax.random.split(key, 6)
    u = lambda k, shape, r: jax.random.uniform(k, shape, jnp.float32, -r, r)
    return {
        # nn.Linear stores (out,in); we keep (in,out) so x @ W == x @ W_torch.T
        "img_embed_w": u(ks[0], (fc_feat_size, input_encoding_size), 0.1),
        "img_embed_b": jnp.zeros((input_encoding_size,), jnp.float32),
        "embed_table": u(ks[1], (vocab_size + 1, input_encoding_size), 0.1),
        "lstm_w_i2h": u(ks[2], (input_encoding_size, 5 * lstm_size), 1.0 / np.sqrt(input_encoding_size)),
        "lstm_b_i2h": jnp.zeros((5 * lstm_size,), jnp.float32),
        "lstm_w_h2h": u(ks[3], (lstm_size, 5 * lstm_size), 1.0 / np.sqrt(lstm_size)),
        "lstm_b_h2h": jnp.zeros((5 * lstm_size,), jnp.float32),
        "logit_w": u(ks[4], (lstm_size, vocab_size), 0.1),
        "logit_b": jnp.zeros((vocab_size,), jnp.float32),
    }


if __name__ == "__main__":
    # small config consistent with the module's __init__
    B, T = 8, 8
    fc_feat_size = 64
    input_encoding_size = 32
    lstm_size = 32
    vocab_size = 128

    key = jax.random.PRNGKey(0)
    k_p, k_f, k_s = jax.random.split(key, 3)

    params = make_params(k_p, fc_feat_size, input_encoding_size, lstm_size, vocab_size)
    fc_feats = jax.random.normal(k_f, (B, fc_feat_size), jnp.float32)
    # token ids in [1, vocab_size] so the sum==0 early break never triggers
    seq = jax.random.randint(k_s, (B, T), 1, vocab_size + 1, jnp.int32)

    out = jax.jit(encoder_decoder_forward)(fc_feats, seq, params)
    out = jax.block_until_ready(out)

    ref = reference_forward(fc_feats, seq, params)
    np.testing.assert_allclose(np.asarray(out), np.asarray(ref), rtol=1e-4, atol=1e-4)
    assert out.shape == (B, T - 1, vocab_size)

    print("KERNEL_OK")
</pallas_src>

<mosaic_0001>
module attributes {stable_mosaic.version = 11 : i64} {
  func.func @_lstm_recurrence_kernel(%arg0: memref<8x8x160xf32, #tpu.memory_space<vmem>>, %arg1: memref<32x160xf32, #tpu.memory_space<vmem>>, %arg2: memref<8x8x32xf32, #tpu.memory_space<vmem>>) attributes {dimension_semantics = [], scalar_prefetch = 0 : i64, scratch_operands = 0 : i64, tpu.core_type = #tpu.core_type<tc>} {
    %c0 = arith.constant 0 : index
    %c0_0 = arith.constant 0 : index
    %0 = vector.load %arg1[%c0, %c0_0] : memref<32x160xf32, #tpu.memory_space<vmem>>, vector<32x160xf32>
    %cst = arith.constant 0.000000e+00 : f32
    %1 = vector.broadcast %cst : f32 to vector<8x32xf32>
    %c0_i32 = arith.constant 0 : i32
    %2 = arith.index_cast %c0_i32 : i32 to index
    %c0_1 = arith.constant 0 : index
    %c0_2 = arith.constant 0 : index
    %3 = vector.load %arg0[%2, %c0_1, %c0_2] : memref<8x8x160xf32, #tpu.memory_space<vmem>>, vector<1x8x160xf32>
    %4 = vector.shape_cast %3 : vector<1x8x160xf32> to vector<8x160xf32>
    %cst_3 = arith.constant dense<0.000000e+00> : vector<8x160xf32>
    %5 = tpu.matmul %1, %0, %cst_3 {dimension_numbers = #tpu.dot_dimension_numbers<[1], [0], [0], [1], [0, 0, 1, 1], [], []>} : vector<8x32xf32>, vector<32x160xf32>, vector<8x160xf32> -> vector<8x160xf32>
    %6 = arith.addf %4, %5 : vector<8x160xf32>
    %7 = vector.extract_strided_slice %6 {offsets = [0, 0], sizes = [8, 32], strides = [1, 1]} : vector<8x160xf32> to vector<8x32xf32>
    %8 = arith.negf %7 : vector<8x32xf32>
    %9 = math.exp %8 : vector<8x32xf32>
    %cst_4 = arith.constant 1.000000e+00 : f32
    %10 = vector.broadcast %cst_4 : f32 to vector<8x32xf32>
    %11 = arith.addf %10, %9 : vector<8x32xf32>
    %12 = arith.divf %10, %11 : vector<8x32xf32>
    %13 = vector.extract_strided_slice %6 {offsets = [0, 32], sizes = [8, 32], strides = [1, 1]} : vector<8x160xf32> to vector<8x32xf32>
    %14 = arith.negf %13 : vector<8x32xf32>
    %15 = math.exp %14 : vector<8x32xf32>
    %cst_5 = arith.constant 1.000000e+00 : f32
    %16 = vector.broadcast %cst_5 : f32 to vector<8x32xf32>
    %17 = arith.addf %16, %15 : vector<8x32xf32>
    %18 = arith.divf %16, %17 : vector<8x32xf32>
    %19 = vector.extract_strided_slice %6 {offsets = [0, 64], sizes = [8, 32], strides = [1, 1]} : vector<8x160xf32> to vector<8x32xf32>
    %20 = arith.negf %19 : vector<8x32xf32>
    %21 = math.exp %20 : vector<8x32xf32>
    %cst_6 = arith.constant 1.000000e+00 : f32
    %22 = vector.broadcast %cst_6 : f32 to vector<8x32xf32>
    %23 = arith.addf %22, %21 : vector<8x32xf32>
    %24 = arith.divf %22, %23 : vector<8x32xf32>
    %25 = vector.extract_strided_slice %6 {offsets = [0, 96], sizes = [8, 32], strides = [1, 1]} : vector<8x160xf32> to vector<8x32xf32>
    %26 = vector.extract_strided_slice %6 {offsets = [0, 128], sizes = [8, 32], strides = [1, 1]} : vector<8x160xf32> to vector<8x32xf32>
    %27 = arith.maximumf %25, %26 : vector<8x32xf32>
    %28 = arith.mulf %18, %1 : vector<8x32xf32>
    %29 = arith.mulf %12, %27 : vector<8x32xf32>
    %30 = arith.addf %28, %29 : vector<8x32xf32>
    %31 = math.tanh %30 : vector<8x32xf32>
    %32 = arith.mulf %24, %31 : vector<8x32xf32>
    %33 = arith.index_cast %c0_i32 : i32 to index
    %c0_7 = arith.constant 0 : index
    %c0_8 = arith.constant 0 : index
    %34 = vector.load %arg2[%33, %c0_7, %c0_8] : memref<8x8x32xf32, #tpu.memory_space<vmem>>, vector<1x8x32xf32>
    %35 = vector.shape_cast %34 : vector<1x8x32xf32> to vector<8x32xf32>
    %36 = vector.shape_cast %32 : vector<8x32xf32> to vector<1x8x32xf32>
    tpu.vector_store %arg2[%33, %c0_7, %c0_8], %36 {strides = array<i32>} : memref<8x8x32xf32, #tpu.memory_space<vmem>>, vector<1x8x32xf32>,
    %c1_i32 = arith.constant 1 : i32
    %37 = arith.index_cast %c1_i32 : i32 to index
    %c0_9 = arith.constant 0 : index
    %c0_10 = arith.constant 0 : index
    %38 = vector.load %arg0[%37, %c0_9, %c0_10] : memref<8x8x160xf32, #tpu.memory_space<vmem>>, vector<1x8x160xf32>
    %39 = vector.shape_cast %38 : vector<1x8x160xf32> to vector<8x160xf32>
    %cst_11 = arith.constant dense<0.000000e+00> : vector<8x160xf32>
    %40 = tpu.matmul %32, %0, %cst_11 {dimension_numbers = #tpu.dot_dimension_numbers<[1], [0], [0], [1], [0, 0, 1, 1], [], []>} : vector<8x32xf32>, vector<32x160xf32>, vector<8x160xf32> -> vector<8x160xf32>
    %41 = arith.addf %39, %40 : vector<8x160xf32>
    %42 = vector.extract_strided_slice %41 {offsets = [0, 0], sizes = [8, 32], strides = [1, 1]} : vector<8x160xf32> to vector<8x32xf32>
    %43 = arith.negf %42 : vector<8x32xf32>
    %44 = math.exp %43 : vector<8x32xf32>
    %cst_12 = arith.constant 1.000000e+00 : f32
    %45 = vector.broadcast %cst_12 : f32 to vector<8x32xf32>
    %46 = arith.addf %45, %44 : vector<8x32xf32>
    %47 = arith.divf %45, %46 : vector<8x32xf32>
    %48 = vector.extract_strided_slice %41 {offsets = [0, 32], sizes = [8, 32], strides = [1, 1]} : vector<8x160xf32> to vector<8x32xf32>
    %49 = arith.negf %48 : vector<8x32xf32>
    %50 = math.exp %49 : vector<8x32xf32>
    %cst_13 = arith.constant 1.000000e+00 : f32
    %51 = vector.broadcast %cst_13 : f32 to vector<8x32xf32>
    %52 = arith.addf %51, %50 : vector<8x32xf32>
    %53 = arith.divf %51, %52 : vector<8x32xf32>
    %54 = vector.extract_strided_slice %41 {offsets = [0, 64], sizes = [8, 32], strides = [1, 1]} : vector<8x160xf32> to vector<8x32xf32>
    %55 = arith.negf %54 : vector<8x32xf32>
    %56 = math.exp %55 : vector<8x32xf32>
    %cst_14 = arith.constant 1.000000e+00 : f32
    %57 = vector.broadcast %cst_14 : f32 to vector<8x32xf32>
    %58 = arith.addf %57, %56 : vector<8x32xf32>
    %59 = arith.divf %57, %58 : vector<8x32xf32>
    %60 = vector.extract_strided_slice %41 {offsets = [0, 96], sizes = [8, 32], strides = [1, 1]} : vector<8x160xf32> to vector<8x32xf32>
    %61 = vector.extract_strided_slice %41 {offsets = [0, 128], sizes = [8, 32], strides = [1, 1]} : vector<8x160xf32> to vector<8x32xf32>
    %62 = arith.maximumf %60, %61 : vector<8x32xf32>
    %63 = arith.mulf %53, %30 : vector<8x32xf32>
    %64 = arith.mulf %47, %62 : vector<8x32xf32>
    %65 = arith.addf %63, %64 : vector<8x32xf32>
    %66 = math.tanh %65 : vector<8x32xf32>
    %67 = arith.mulf %59, %66 : vector<8x32xf32>
    %68 = arith.index_cast %c1_i32 : i32 to index
    %c0_15 = arith.constant 0 : index
    %c0_16 = arith.constant 0 : index
    %69 = vector.load %arg2[%68, %c0_15, %c0_16] : memref<8x8x32xf32, #tpu.memory_space<vmem>>, vector<1x8x32xf32>
    %70 = vector.shape_cast %69 : vector<1x8x32xf32> to vector<8x32xf32>
    %71 = vector.shape_cast %67 : vector<8x32xf32> to vector<1x8x32xf32>
    tpu.vector_store %arg2[%68, %c0_15, %c0_16], %71 {strides = array<i32>} : memref<8x8x32xf32, #tpu.memory_space<vmem>>, vector<1x8x32xf32>,
    %c2_i32 = arith.constant 2 : i32
    %72 = arith.index_cast %c2_i32 : i32 to index
    %c0_17 = arith.constant 0 : index
    %c0_18 = arith.constant 0 : index
    %73 = vector.load %arg0[%72, %c0_17, %c0_18] : memref<8x8x160xf32, #tpu.memory_space<vmem>>, vector<1x8x160xf32>
    %74 = vector.shape_cast %73 : vector<1x8x160xf32> to vector<8x160xf32>
    %cst_19 = arith.constant dense<0.000000e+00> : vector<8x160xf32>
    %75 = tpu.matmul %67, %0, %cst_19 {dimension_numbers = #tpu.dot_dimension_numbers<[1], [0], [0], [1], [0, 0, 1, 1], [], []>} : vector<8x32xf32>, vector<32x160xf32>, vector<8x160xf32> -> vector<8x160xf32>
    %76 = arith.addf %74, %75 : vector<8x160xf32>
    %77 = vector.extract_strided_slice %76 {offsets = [0, 0], sizes = [8, 32], strides = [1, 1]} : vector<8x160xf32> to vector<8x32xf32>
    %78 = arith.negf %77 : vector<8x32xf32>
    %79 = math.exp %78 : vector<8x32xf32>
    %cst_20 = arith.constant 1.000000e+00 : f32
    %80 = vector.broadcast %cst_20 : f32 to vector<8x32xf32>
    %81 = arith.addf %80, %79 : vector<8x32xf32>
    %82 = arith.divf %80, %81 : vector<8x32xf32>
    %83 = vector.extract_strided_slice %76 {offsets = [0, 32], sizes = [8, 32], strides = [1, 1]} : vector<8x160xf32> to vector<8x32xf32>
    %84 = arith.negf %83 : vector<8x32xf32>
    %85 = math.exp %84 : vector<8x32xf32>
    %cst_21 = arith.constant 1.000000e+00 : f32
    %86 = vector.broadcast %cst_21 : f32 to vector<8x32xf32>
    %87 = arith.addf %86, %85 : vector<8x32xf32>
    %88 = arith.divf %86, %87 : vector<8x32xf32>
    %89 = vector.extract_strided_slice %76 {offsets = [0, 64], sizes = [8, 32], strides = [1, 1]} : vector<8x160xf32> to vector<8x32xf32>
    %90 = arith.negf %89 : vector<8x32xf32>
    %91 = math.exp %90 : vector<8x32xf32>
    %cst_22 = arith.constant 1.000000e+00 : f32
    %92 = vector.broadcast %cst_22 : f32 to vector<8x32xf32>
    %93 = arith.addf %92, %91 : vector<8x32xf32>
    %94 = arith.divf %92, %93 : vector<8x32xf32>
    %95 = vector.extract_strided_slice %76 {offsets = [0, 96], sizes = [8, 32], strides = [1, 1]} : vector<8x160xf32> to vector<8x32xf32>
    %96 = vector.extract_strided_slice %76 {offsets = [0, 128], sizes = [8, 32], strides = [1, 1]} : vector<8x160xf32> to vector<8x32xf32>
    %97 = arith.maximumf %95, %96 : vector<8x32xf32>
    %98 = arith.mulf %88, %65 : vector<8x32xf32>
    %99 = arith.mulf %82, %97 : vector<8x32xf32>
    %100 = arith.addf %98, %99 : vector<8x32xf32>
    %101 = math.tanh %100 : vector<8x32xf32>
    %102 = arith.mulf %94, %101 : vector<8x32xf32>
    %103 = arith.index_cast %c2_i32 : i32 to index
    %c0_23 = arith.constant 0 : index
    %c0_24 = arith.constant 0 : index
    %104 = vector.load %arg2[%103, %c0_23, %c0_24] : memref<8x8x32xf32, #tpu.memory_space<vmem>>, vector<1x8x32xf32>
    %105 = vector.shape_cast %104 : vector<1x8x32xf32> to vector<8x32xf32>
    %106 = vector.shape_cast %102 : vector<8x32xf32> to vector<1x8x32xf32>
    tpu.vector_store %arg2[%103, %c0_23, %c0_24], %106 {strides = array<i32>} : memref<8x8x32xf32, #tpu.memory_space<vmem>>, vector<1x8x32xf32>,
    %c3_i32 = arith.constant 3 : i32
    %107 = arith.index_cast %c3_i32 : i32 to index
    %c0_25 = arith.constant 0 : index
    %c0_26 = arith.constant 0 : index
    %108 = vector.load %arg0[%107, %c0_25, %c0_26] : memref<8x8x160xf32, #tpu.memory_space<vmem>>, vector<1x8x160xf32>
    %109 = vector.shape_cast %108 : vector<1x8x160xf32> to vector<8x160xf32>
    %cst_27 = arith.constant dense<0.000000e+00> : vector<8x160xf32>
    %110 = tpu.matmul %102, %0, %cst_27 {dimension_numbers = #tpu.dot_dimension_numbers<[1], [0], [0], [1], [0, 0, 1, 1], [], []>} : vector<8x32xf32>, vector<32x160xf32>, vector<8x160xf32> -> vector<8x160xf32>
    %111 = arith.addf %109, %110 : vector<8x160xf32>
    %112 = vector.extract_strided_slice %111 {offsets = [0, 0], sizes = [8, 32], strides = [1, 1]} : vector<8x160xf32> to vector<8x32xf32>
    %113 = arith.negf %112 : vector<8x32xf32>
    %114 = math.exp %113 : vector<8x32xf32>
    %cst_28 = arith.constant 1.000000e+00 : f32
    %115 = vector.broadcast %cst_28 : f32 to vector<8x32xf32>
    %116 = arith.addf %115, %114 : vector<8x32xf32>
    %117 = arith.divf %115, %116 : vector<8x32xf32>
    %118 = vector.extract_strided_slice %111 {offsets = [0, 32], sizes = [8, 32], strides = [1, 1]} : vector<8x160xf32> to vector<8x32xf32>
    %119 = arith.negf %118 : vector<8x32xf32>
    %120 = math.exp %119 : vector<8x32xf32>
    %cst_29 = arith.constant 1.000000e+00 : f32
    %121 = vector.broadcast %cst_29 : f32 to vector<8x32xf32>
    %122 = arith.addf %121, %120 : vector<8x32xf32>
    %123 = arith.divf %121, %122 : vector<8x32xf32>
    %124 = vector.extract_strided_slice %111 {offsets = [0, 64], sizes = [8, 32], strides = [1, 1]} : vector<8x160xf32> to vector<8x32xf32>
    %125 = arith.negf %124 : vector<8x32xf32>
    %126 = math.exp %125 : vector<8x32xf32>
    %cst_30 = arith.constant 1.000000e+00 : f32
    %127 = vector.broadcast %cst_30 : f32 to vector<8x32xf32>
    %128 = arith.addf %127, %126 : vector<8x32xf32>
    %129 = arith.divf %127, %128 : vector<8x32xf32>
    %130 = vector.extract_strided_slice %111 {offsets = [0, 96], sizes = [8, 32], strides = [1, 1]} : vector<8x160xf32> to vector<8x32xf32>
    %131 = vector.extract_strided_slice %111 {offsets = [0, 128], sizes = [8, 32], strides = [1, 1]} : vector<8x160xf32> to vector<8x32xf32>
    %132 = arith.maximumf %130, %131 : vector<8x32xf32>
    %133 = arith.mulf %123, %100 : vector<8x32xf32>
    %134 = arith.mulf %117, %132 : vector<8x32xf32>
    %135 = arith.addf %133, %134 : vector<8x32xf32>
    %136 = math.tanh %135 : vector<8x32xf32>
    %137 = arith.mulf %129, %136 : vector<8x32xf32>
    %138 = arith.index_cast %c3_i32 : i32 to index
    %c0_31 = arith.constant 0 : index
    %c0_32 = arith.constant 0 : index
    %139 = vector.load %arg2[%138, %c0_31, %c0_32] : memref<8x8x32xf32, #tpu.memory_space<vmem>>, vector<1x8x32xf32>
    %140 = vector.shape_cast %139 : vector<1x8x32xf32> to vector<8x32xf32>
    %141 = vector.shape_cast %137 : vector<8x32xf32> to vector<1x8x32xf32>
    tpu.vector_store %arg2[%138, %c0_31, %c0_32], %141 {strides = array<i32>} : memref<8x8x32xf32, #tpu.memory_space<vmem>>, vector<1x8x32xf32>,
    %c4_i32 = arith.constant 4 : i32
    %142 = arith.index_cast %c4_i32 : i32 to index
    %c0_33 = arith.constant 0 : index
    %c0_34 = arith.constant 0 : index
    %143 = vector.load %arg0[%142, %c0_33, %c0_34] : memref<8x8x160xf32, #tpu.memory_space<vmem>>, vector<1x8x160xf32>
    %144 = vector.shape_cast %143 : vector<1x8x160xf32> to vector<8x160xf32>
    %cst_35 = arith.constant dense<0.000000e+00> : vector<8x160xf32>
    %145 = tpu.matmul %137, %0, %cst_35 {dimension_numbers = #tpu.dot_dimension_numbers<[1], [0], [0], [1], [0, 0, 1, 1], [], []>} : vector<8x32xf32>, vector<32x160xf32>, vector<8x160xf32> -> vector<8x160xf32>
    %146 = arith.addf %144, %145 : vector<8x160xf32>
    %147 = vector.extract_strided_slice %146 {offsets = [0, 0], sizes = [8, 32], strides = [1, 1]} : vector<8x160xf32> to vector<8x32xf32>
    %148 = arith.negf %147 : vector<8x32xf32>
    %149 = math.exp %148 : vector<8x32xf32>
    %cst_36 = arith.constant 1.000000e+00 : f32
    %150 = vector.broadcast %cst_36 : f32 to vector<8x32xf32>
    %151 = arith.addf %150, %149 : vector<8x32xf32>
    %152 = arith.divf %150, %151 : vector<8x32xf32>
    %153 = vector.extract_strided_slice %146 {offsets = [0, 32], sizes = [8, 32], strides = [1, 1]} : vector<8x160xf32> to vector<8x32xf32>
    %154 = arith.negf %153 : vector<8x32xf32>
    %155 = math.exp %154 : vector<8x32xf32>
    %cst_37 = arith.constant 1.000000e+00 : f32
    %156 = vector.broadcast %cst_37 : f32 to vector<8x32xf32>
    %157 = arith.addf %156, %155 : vector<8x32xf32>
    %158 = arith.divf %156, %157 : vector<8x32xf32>
    %159 = vector.extract_strided_slice %146 {offsets = [0, 64], sizes = [8, 32], strides = [1, 1]} : vector<8x160xf32> to vector<8x32xf32>
    %160 = arith.negf %159 : vector<8x32xf32>
    %161 = math.exp %160 : vector<8x32xf32>
    %cst_38 = arith.constant 1.000000e+00 : f32
    %162 = vector.broadcast %cst_38 : f32 to vector<8x32xf32>
    %163 = arith.addf %162, %161 : vector<8x32xf32>
    %164 = arith.divf %162, %163 : vector<8x32xf32>
    %165 = vector.extract_strided_slice %146 {offsets = [0, 96], sizes = [8, 32], strides = [1, 1]} : vector<8x160xf32> to vector<8x32xf32>
    %166 = vector.extract_strided_slice %146 {offsets = [0, 128], sizes = [8, 32], strides = [1, 1]} : vector<8x160xf32> to vector<8x32xf32>
    %167 = arith.maximumf %165, %166 : vector<8x32xf32>
    %168 = arith.mulf %158, %135 : vector<8x32xf32>
    %169 = arith.mulf %152, %167 : vector<8x32xf32>
    %170 = arith.addf %168, %169 : vector<8x32xf32>
    %171 = math.tanh %170 : vector<8x32xf32>
    %172 = arith.mulf %164, %171 : vector<8x32xf32>
    %173 = arith.index_cast %c4_i32 : i32 to index
    %c0_39 = arith.constant 0 : index
    %c0_40 = arith.constant 0 : index
    %174 = vector.load %arg2[%173, %c0_39, %c0_40] : memref<8x8x32xf32, #tpu.memory_space<vmem>>, vector<1x8x32xf32>
    %175 = vector.shape_cast %174 : vector<1x8x32xf32> to vector<8x32xf32>
    %176 = vector.shape_cast %172 : vector<8x32xf32> to vector<1x8x32xf32>
    tpu.vector_store %arg2[%173, %c0_39, %c0_40], %176 {strides = array<i32>} : memref<8x8x32xf32, #tpu.memory_space<vmem>>, vector<1x8x32xf32>,
    %c5_i32 = arith.constant 5 : i32
    %177 = arith.index_cast %c5_i32 : i32 to index
    %c0_41 = arith.constant 0 : index
    %c0_42 = arith.constant 0 : index
    %178 = vector.load %arg0[%177, %c0_41, %c0_42] : memref<8x8x160xf32, #tpu.memory_space<vmem>>, vector<1x8x160xf32>
    %179 = vector.shape_cast %178 : vector<1x8x160xf32> to vector<8x160xf32>
    %cst_43 = arith.constant dense<0.000000e+00> : vector<8x160xf32>
    %180 = tpu.matmul %172, %0, %cst_43 {dimension_numbers = #tpu.dot_dimension_numbers<[1], [0], [0], [1], [0, 0, 1, 1], [], []>} : vector<8x32xf32>, vector<32x160xf32>, vector<8x160xf32> -> vector<8x160xf32>
    %181 = arith.addf %179, %180 : vector<8x160xf32>
    %182 = vector.extract_strided_slice %181 {offsets = [0, 0], sizes = [8, 32], strides = [1, 1]} : vector<8x160xf32> to vector<8x32xf32>
    %183 = arith.negf %182 : vector<8x32xf32>
    %184 = math.exp %183 : vector<8x32xf32>
    %cst_44 = arith.constant 1.000000e+00 : f32
    %185 = vector.broadcast %cst_44 : f32 to vector<8x32xf32>
    %186 = arith.addf %185, %184 : vector<8x32xf32>
    %187 = arith.divf %185, %186 : vector<8x32xf32>
    %188 = vector.extract_strided_slice %181 {offsets = [0, 32], sizes = [8, 32], strides = [1, 1]} : vector<8x160xf32> to vector<8x32xf32>
    %189 = arith.negf %188 : vector<8x32xf32>
    %190 = math.exp %189 : vector<8x32xf32>
    %cst_45 = arith.constant 1.000000e+00 : f32
    %191 = vector.broadcast %cst_45 : f32 to vector<8x32xf32>
    %192 = arith.addf %191, %190 : vector<8x32xf32>
    %193 = arith.divf %191, %192 : vector<8x32xf32>
    %194 = vector.extract_strided_slice %181 {offsets = [0, 64], sizes = [8, 32], strides = [1, 1]} : vector<8x160xf32> to vector<8x32xf32>
    %195 = arith.negf %194 : vector<8x32xf32>
    %196 = math.exp %195 : vector<8x32xf32>
    %cst_46 = arith.constant 1.000000e+00 : f32
    %197 = vector.broadcast %cst_46 : f32 to vector<8x32xf32>
    %198 = arith.addf %197, %196 : vector<8x32xf32>
    %199 = arith.divf %197, %198 : vector<8x32xf32>
    %200 = vector.extract_strided_slice %181 {offsets = [0, 96], sizes = [8, 32], strides = [1, 1]} : vector<8x160xf32> to vector<8x32xf32>
    %201 = vector.extract_strided_slice %181 {offsets = [0, 128], sizes = [8, 32], strides = [1, 1]} : vector<8x160xf32> to vector<8x32xf32>
    %202 = arith.maximumf %200, %201 : vector<8x32xf32>
    %203 = arith.mulf %193, %170 : vector<8x32xf32>
    %204 = arith.mulf %187, %202 : vector<8x32xf32>
    %205 = arith.addf %203, %204 : vector<8x32xf32>
    %206 = math.tanh %205 : vector<8x32xf32>
    %207 = arith.mulf %199, %206 : vector<8x32xf32>
    %208 = arith.index_cast %c5_i32 : i32 to index
    %c0_47 = arith.constant 0 : index
    %c0_48 = arith.constant 0 : index
    %209 = vector.load %arg2[%208, %c0_47, %c0_48] : memref<8x8x32xf32, #tpu.memory_space<vmem>>, vector<1x8x32xf32>
    %210 = vector.shape_cast %209 : vector<1x8x32xf32> to vector<8x32xf32>
    %211 = vector.shape_cast %207 : vector<8x32xf32> to vector<1x8x32xf32>
    tpu.vector_store %arg2[%208, %c0_47, %c0_48], %211 {strides = array<i32>} : memref<8x8x32xf32, #tpu.memory_space<vmem>>, vector<1x8x32xf32>,
    %c6_i32 = arith.constant 6 : i32
    %212 = arith.index_cast %c6_i32 : i32 to index
    %c0_49 = arith.constant 0 : index
    %c0_50 = arith.constant 0 : index
    %213 = vector.load %arg0[%212, %c0_49, %c0_50] : memref<8x8x160xf32, #tpu.memory_space<vmem>>, vector<1x8x160xf32>
    %214 = vector.shape_cast %213 : vector<1x8x160xf32> to vector<8x160xf32>
    %cst_51 = arith.constant dense<0.000000e+00> : vector<8x160xf32>
    %215 = tpu.matmul %207, %0, %cst_51 {dimension_numbers = #tpu.dot_dimension_numbers<[1], [0], [0], [1], [0, 0, 1, 1], [], []>} : vector<8x32xf32>, vector<32x160xf32>, vector<8x160xf32> -> vector<8x160xf32>
    %216 = arith.addf %214, %215 : vector<8x160xf32>
    %217 = vector.extract_strided_slice %216 {offsets = [0, 0], sizes = [8, 32], strides = [1, 1]} : vector<8x160xf32> to vector<8x32xf32>
    %218 = arith.negf %217 : vector<8x32xf32>
    %219 = math.exp %218 : vector<8x32xf32>
    %cst_52 = arith.constant 1.000000e+00 : f32
    %220 = vector.broadcast %cst_52 : f32 to vector<8x32xf32>
    %221 = arith.addf %220, %219 : vector<8x32xf32>
    %222 = arith.divf %220, %221 : vector<8x32xf32>
    %223 = vector.extract_strided_slice %216 {offsets = [0, 32], sizes = [8, 32], strides = [1, 1]} : vector<8x160xf32> to vector<8x32xf32>
    %224 = arith.negf %223 : vector<8x32xf32>
    %225 = math.exp %224 : vector<8x32xf32>
    %cst_53 = arith.constant 1.000000e+00 : f32
    %226 = vector.broadcast %cst_53 : f32 to vector<8x32xf32>
    %227 = arith.addf %226, %225 : vector<8x32xf32>
    %228 = arith.divf %226, %227 : vector<8x32xf32>
    %229 = vector.extract_strided_slice %216 {offsets = [0, 64], sizes = [8, 32], strides = [1, 1]} : vector<8x160xf32> to vector<8x32xf32>
    %230 = arith.negf %229 : vector<8x32xf32>
    %231 = math.exp %230 : vector<8x32xf32>
    %cst_54 = arith.constant 1.000000e+00 : f32
    %232 = vector.broadcast %cst_54 : f32 to vector<8x32xf32>
    %233 = arith.addf %232, %231 : vector<8x32xf32>
    %234 = arith.divf %232, %233 : vector<8x32xf32>
    %235 = vector.extract_strided_slice %216 {offsets = [0, 96], sizes = [8, 32], strides = [1, 1]} : vector<8x160xf32> to vector<8x32xf32>
    %236 = vector.extract_strided_slice %216 {offsets = [0, 128], sizes = [8, 32], strides = [1, 1]} : vector<8x160xf32> to vector<8x32xf32>
    %237 = arith.maximumf %235, %236 : vector<8x32xf32>
    %238 = arith.mulf %228, %205 : vector<8x32xf32>
    %239 = arith.mulf %222, %237 : vector<8x32xf32>
    %240 = arith.addf %238, %239 : vector<8x32xf32>
    %241 = math.tanh %240 : vector<8x32xf32>
    %242 = arith.mulf %234, %241 : vector<8x32xf32>
    %243 = arith.index_cast %c6_i32 : i32 to index
    %c0_55 = arith.constant 0 : index
    %c0_56 = arith.constant 0 : index
    %244 = vector.load %arg2[%243, %c0_55, %c0_56] : memref<8x8x32xf32, #tpu.memory_space<vmem>>, vector<1x8x32xf32>
    %245 = vector.shape_cast %244 : vector<1x8x32xf32> to vector<8x32xf32>
    %246 = vector.shape_cast %242 : vector<8x32xf32> to vector<1x8x32xf32>
    tpu.vector_store %arg2[%243, %c0_55, %c0_56], %246 {strides = array<i32>} : memref<8x8x32xf32, #tpu.memory_space<vmem>>, vector<1x8x32xf32>,
    %c7_i32 = arith.constant 7 : i32
    %247 = arith.index_cast %c7_i32 : i32 to index
    %c0_57 = arith.constant 0 : index
    %c0_58 = arith.constant 0 : index
    %248 = vector.load %arg0[%247, %c0_57, %c0_58] : memref<8x8x160xf32, #tpu.memory_space<vmem>>, vector<1x8x160xf32>
    %249 = vector.shape_cast %248 : vector<1x8x160xf32> to vector<8x160xf32>
    %cst_59 = arith.constant dense<0.000000e+00> : vector<8x160xf32>
    %250 = tpu.matmul %242, %0, %cst_59 {dimension_numbers = #tpu.dot_dimension_numbers<[1], [0], [0], [1], [0, 0, 1, 1], [], []>} : vector<8x32xf32>, vector<32x160xf32>, vector<8x160xf32> -> vector<8x160xf32>
    %251 = arith.addf %249, %250 : vector<8x160xf32>
    %252 = vector.extract_strided_slice %251 {offsets = [0, 0], sizes = [8, 32], strides = [1, 1]} : vector<8x160xf32> to vector<8x32xf32>
    %253 = arith.negf %252 : vector<8x32xf32>
    %254 = math.exp %253 : vector<8x32xf32>
    %cst_60 = arith.constant 1.000000e+00 : f32
    %255 = vector.broadcast %cst_60 : f32 to vector<8x32xf32>
    %256 = arith.addf %255, %254 : vector<8x32xf32>
    %257 = arith.divf %255, %256 : vector<8x32xf32>
    %258 = vector.extract_strided_slice %251 {offsets = [0, 32], sizes = [8, 32], strides = [1, 1]} : vector<8x160xf32> to vector<8x32xf32>
    %259 = arith.negf %258 : vector<8x32xf32>
    %260 = math.exp %259 : vector<8x32xf32>
    %cst_61 = arith.constant 1.000000e+00 : f32
    %261 = vector.broadcast %cst_61 : f32 to vector<8x32xf32>
    %262 = arith.addf %261, %260 : vector<8x32xf32>
    %263 = arith.divf %261, %262 : vector<8x32xf32>
    %264 = vector.extract_strided_slice %251 {offsets = [0, 64], sizes = [8, 32], strides = [1, 1]} : vector<8x160xf32> to vector<8x32xf32>
    %265 = arith.negf %264 : vector<8x32xf32>
    %266 = math.exp %265 : vector<8x32xf32>
    %cst_62 = arith.constant 1.000000e+00 : f32
    %267 = vector.broadcast %cst_62 : f32 to vector<8x32xf32>
    %268 = arith.addf %267, %266 : vector<8x32xf32>
    %269 = arith.divf %267, %268 : vector<8x32xf32>
    %270 = vector.extract_strided_slice %251 {offsets = [0, 96], sizes = [8, 32], strides = [1, 1]} : vector<8x160xf32> to vector<8x32xf32>
    %271 = vector.extract_strided_slice %251 {offsets = [0, 128], sizes = [8, 32], strides = [1, 1]} : vector<8x160xf32> to vector<8x32xf32>
    %272 = arith.maximumf %270, %271 : vector<8x32xf32>
    %273 = arith.mulf %263, %240 : vector<8x32xf32>
    %274 = arith.mulf %257, %272 : vector<8x32xf32>
    %275 = arith.addf %273, %274 : vector<8x32xf32>
    %276 = math.tanh %275 : vector<8x32xf32>
    %277 = arith.mulf %269, %276 : vector<8x32xf32>
    %278 = arith.index_cast %c7_i32 : i32 to index
    %c0_63 = arith.constant 0 : index
    %c0_64 = arith.constant 0 : index
    %279 = vector.load %arg2[%278, %c0_63, %c0_64] : memref<8x8x32xf32, #tpu.memory_space<vmem>>, vector<1x8x32xf32>
    %280 = vector.shape_cast %279 : vector<1x8x32xf32> to vector<8x32xf32>
    %281 = vector.shape_cast %277 : vector<8x32xf32> to vector<1x8x32xf32>
    tpu.vector_store %arg2[%278, %c0_63, %c0_64], %281 {strides = array<i32>} : memref<8x8x32xf32, #tpu.memory_space<vmem>>, vector<1x8x32xf32>,
    %c8_i32 = arith.constant 8 : i32
    return
  }
}

module attributes {stable_mosaic.version = 11 : i64} {
  func.func @_logit_logsoftmax_kernel(%arg0: i32, %arg1: memref<56x32xf32, #tpu.memory_space<vmem>>, %arg2: memref<32x128xf32, #tpu.memory_space<vmem>>, %arg3: memref<1x128xf32, #tpu.memory_space<vmem>>, %arg4: memref<56x128xf32, #tpu.memory_space<vmem>>) attributes {dimension_semantics = [#tpu.dimension_semantics<parallel>], iteration_bounds = array<i64: 1>, scalar_prefetch = 0 : i64, scratch_operands = 0 : i64, tpu.core_type = #tpu.core_type<tc>, window_params = [{transform_indices = @transform_0, window_bounds = array<i64: 56, 32>}, {pipeline_mode = #tpu.pipeline_mode<synchronous>, transform_indices = @transform_1, window_bounds = array<i64: 32, 128>}, {pipeline_mode = #tpu.pipeline_mode<synchronous>, transform_indices = @transform_2, window_bounds = array<i64: 1, 128>}, {transform_indices = @transform_3, window_bounds = array<i64: 56, 128>}]} {
    %c0 = arith.constant 0 : index
    %c0_0 = arith.constant 0 : index
    %0 = vector.load %arg1[%c0, %c0_0] : memref<56x32xf32, #tpu.memory_space<vmem>>, vector<56x32xf32>
    %c0_1 = arith.constant 0 : index
    %c0_2 = arith.constant 0 : index
    %1 = vector.load %arg2[%c0_1, %c0_2] : memref<32x128xf32, #tpu.memory_space<vmem>>, vector<32x128xf32>
    %cst = arith.constant dense<0.000000e+00> : vector<56x128xf32>
    %2 = tpu.matmul %0, %1, %cst {dimension_numbers = #tpu.dot_dimension_numbers<[1], [0], [0], [1], [0, 0, 1, 1], [], []>} : vector<56x32xf32>, vector<32x128xf32>, vector<56x128xf32> -> vector<56x128xf32>
    %c0_3 = arith.constant 0 : index
    %c0_4 = arith.constant 0 : index
    %3 = vector.load %arg3[%c0_3, %c0_4] : memref<1x128xf32, #tpu.memory_space<vmem>>, vector<1x128xf32>
    %4 = vector.broadcast %3 : vector<1x128xf32> to vector<56x128xf32>
    %5 = arith.addf %2, %4 : vector<56x128xf32>
    %cst_5 = arith.constant dense<0xFF800000> : vector<56xf32>
    %6 = vector.multi_reduction <maximumf>, %5, %cst_5 [1] : vector<56x128xf32> to vector<56xf32>
    %7 = vector.shape_cast %6 : vector<56xf32> to vector<56x1xf32>
    %8 = vector.broadcast %7 : vector<56x1xf32> to vector<56x128xf32>
    %9 = arith.subf %5, %8 : vector<56x128xf32>
    %10 = math.exp %9 : vector<56x128xf32>
    %cst_6 = arith.constant dense<0.000000e+00> : vector<56xf32>
    %11 = vector.multi_reduction <add>, %10, %cst_6 [1] : vector<56x128xf32> to vector<56xf32>
    %12 = vector.shape_cast %11 : vector<56xf32> to vector<56x1xf32>
    %13 = math.log %12 : vector<56x1xf32>
    %14 = vector.broadcast %13 : vector<56x1xf32> to vector<56x128xf32>
    %15 = arith.subf %9, %14 : vector<56x128xf32>
    %c0_7 = arith.constant 0 : index
    %c0_8 = arith.constant 0 : index
    %16 = vector.load %arg4[%c0_7, %c0_8] : memref<56x128xf32, #tpu.memory_space<vmem>>, vector<56x128xf32>
    tpu.vector_store %arg4[%c0_7, %c0_8], %15 {strides = array<i32>} : memref<56x128xf32, #tpu.memory_space<vmem>>, vector<56x128xf32>,
    return
  }
  func.func @transform_0(%arg0: i32) -> (i32, i32) {
    %c0_i32 = arith.constant 0 : i32
    %c0_i32_0 = arith.constant 0 : i32
    return %arg0, %c0_i32 : i32, i32
  }
  func.func @transform_1(%arg0: i32) -> (i32, i32) {
    %c0_i32 = arith.constant 0 : i32
    %c0_i32_0 = arith.constant 0 : i32
    %c0_i32_1 = arith.constant 0 : i32
    return %c0_i32, %c0_i32_0 : i32, i32
  }
  func.func @transform_2(%arg0: i32) -> (i32, i32) {
    %c0_i32 = arith.constant 0 : i32
    %c0_i32_0 = arith.constant 0 : i32
    %c0_i32_1 = arith.constant 0 : i32
    return %c0_i32, %c0_i32_0 : i32, i32
  }
  func.func @transform_3(%arg0: i32) -> (i32, i32) {
    %c0_i32 = arith.constant 0 : i32
    %c0_i32_0 = arith.constant 0 : i32
    return %arg0, %c0_i32 : i32, i32
  }
}

</mosaic_0001>

<bundles_post_ra>
// kernel: encoder_decoder_forward.3
= control target key start
LH: loop header
LB: loop body
LE: loop exit
PB: predicated region body
PF: predicated region fallthrough
CT: control target
= control target key end

     0   :  { %8 = vsyncpa [#allocation3], 0  ;;  %s593_s0 = inlined_call_operand.hbm [shape: f32[56,32], index: 0, kind: input, shape index: {}]   ;;  %s594_s1 = inlined_call_operand.hbm [shape: f32[32,128], index: 1, kind: input, shape index: {}]   ;;  %s595_s2 = inlined_call_operand.hbm [shape: f32[1,128], index: 2, kind: input, shape index: {}]   ;;  %s596_s3 = inlined_call_operand.hbm [shape: f32[56,128], index: 3, kind: output, shape index: {}]  }
   0x1   :  { %9 = vsyncpa [#allocation6], 0 }
   0x2   :  { %10 = vsyncpa [#allocation4], 0  ;;  %s478_s12 = smov [#allocation5]   ;;  %s479_s14 = smov [#allocation2]  }
   0x3   :  { %s28_s13 = sshll.u32 %s478_s12, 4  ;;  %s16_s15 = sshll.u32 %s479_s14, 4  ;;  %s29_s13 = int_to_ptr.vmem [resolvable:$true] %s28_s13  ;;  %s507_s15 = int_to_ptr.vmem [resolvable:$true] %s16_s15 }
   0x4   :  { %s384_s18 = scalar_lea.hbm %s594_s1, 512 }
   0x5   :  { %p385_p0 = scmp.ne.s32.totalorder %s594_s1, %s384_s18  ;;  %p388_p1 = scmp.lt.u32.totalorder %s384_s18, %s594_s1 }
   0x7   :  { %p390_p2 = pnand %p388_p1, %p385_p0 }
   0x9   :  { %393 = shalt.err (!%p390_p2)
}
   0xa   :  { %s394_s23 = scalar_lea.vmem %s29_s13, 512  ;;  %p399_p4 = scmp.lt.s32.totalorder %s29_s13, %s29_s13 }
   0xb   :  { %p395_p3 = scmp.ne.s32.totalorder %s29_s13, %s394_s23  ;;  %p400_p5 = scmp.lt.s32.totalorder %s394_s23, %s394_s23 }
   0xd   :  { %p401_p6 = por %p400_p5, %p399_p4 }
   0xf   :  { %p402_p7 = pnand %p401_p6, %p395_p3 }
  0x11   :  { %405 = shalt.err (!%p402_p7)
}
  0x12   :  { %s480_s24 = smov 128   ;;  %s481_s25 = smov 8  }
  0x13   :  { %34 = dma.hbm_to_vmem [thread:$0]  %s594_s1, 512, %s29_s13, [#allocation6], %s480_s24, %s480_s24, %s481_s25  }
  0x14   :  { %s406_s30 = scalar_lea.hbm %s593_s0, 896 }
  0x15   :  { %p407_p8 = scmp.ne.s32.totalorder %s593_s0, %s406_s30  ;;  %p410_p9 = scmp.lt.u32.totalorder %s406_s30, %s593_s0 }
  0x17   :  { %p412_p10 = pnand %p410_p9, %p407_p8 }
  0x19   :  { %415 = shalt.err (!%p412_p10)
}
  0x1a   :  { %s416_s8 = scalar_lea.vmem %s507_s15, 896  ;;  %p421_p12 = scmp.lt.s32.totalorder %s507_s15, %s507_s15 }
  0x1b   :  { %p417_p11 = scmp.ne.s32.totalorder %s507_s15, %s416_s8  ;;  %p422_p13 = scmp.lt.s32.totalorder %s416_s8, %s416_s8 }
  0x1d   :  { %p423_p0 = por %p422_p13, %p421_p12 }
  0x1f   :  { %p424_p1 = pnand %p423_p0, %p417_p11 }
  0x21   :  { %427 = shalt.err (!%p424_p1)
}
  0x22   :  { %22 = dma.hbm_to_vmem [thread:$0]  %s593_s0, 896, %s507_s15, [#allocation3], %s480_s24, %s480_s24, %s481_s25  }
  0x23   :  { %s482_s10 = smov [#allocation7]   ;;  %s428_s14 = scalar_lea.hbm %s595_s2, 16 }
  0x24   :  { %s41_s11 = sshll.u32 %s482_s10, 4  ;;  %p429_p2 = scmp.ne.s32.totalorder %s595_s2, %s428_s14  ;;  %s42_s11 = int_to_ptr.vmem [resolvable:$true] %s41_s11 }
  0x25   :  { %p432_p3 = scmp.lt.u32.totalorder %s428_s14, %s595_s2 }
  0x27   :  { %p434_p4 = pnand %p432_p3, %p429_p2 }
  0x29   :  { %437 = shalt.err (!%p434_p4)
}
  0x2a   :  { %s438_s20 = scalar_lea.vmem %s42_s11, 16  ;;  %s442_s0 = scalar_lea.vmem %s42_s11, 32 }
  0x2b   :  { %p439_p5 = scmp.ne.s32.totalorder %s42_s11, %s438_s20  ;;  %p443_p6 = scmp.lt.s32.totalorder %s42_s11, %s42_s11 }
  0x2c   :  { %p444_p7 = scmp.lt.s32.totalorder %s442_s0, %s438_s20 }
  0x2e   :  { %p445_p8 = por %p444_p7, %p443_p6 }
  0x30   :  { %p446_p9 = pnand %p445_p8, %p439_p5 }
  0x32   :  { %449 = shalt.err (!%p446_p9)
}
  0x33   :  { %44 = dma.hbm_to_vmem [thread:$0]  %s595_s2, 16, %s42_s11, [#allocation6]  }
  0x34   :  { %472 = dma.done.wait [#allocation3], 896  }
  0x35   :  { %473 = vsyncadd [#allocation3], 4294966400 }
  0x36   :  { %474 = dma.done.wait [#allocation6], 528  }
  0x37   :  { %475 = vsyncadd [#allocation6], 4294966768  ;;  %v483_v0 = vmov 0.0|0.0   ;;  %vm484_vm0 = vmmov 0   ;;  %v485_v1 = vmov 0.0   ;;  %v61_v2 = vld [vmem:[#allocation5] sm:$0xff] }
  0x38   :  { %337 = vmatprep.subr.bf16.mxu0 %v483_v0  ;;  %343 = vmatprep.subr.bf16.mxu1 %v483_v0  ;;  %v62_v3 = vld [vmem:[#allocation5 + $0x8] sm:$0xff]  ;;  %v63_v4 = vld [vmem:[#allocation5 + $0x10] sm:$0xff]  ;;  %v64_v6 = vld [vmem:[#allocation5 + $0x18] sm:$0xff]  ;;  %vm72_vm1 = vcmask 261120   ;;  %s486_s2 = smov [#allocation8]  }
  0x39   :  { %316 = vmatprep.mubr.msk.f32.mxu0 %vm484_vm0, %v485_v1  ;;  %328 = vmatprep.mubr.msk.f32.mxu1 %vm484_vm0, %v485_v1  ;;  %v338_v5 = vpack.c.bf16 %v62_v3, %v61_v2  ;;  %v341_v7 = vpack.c.bf16 %v64_v6, %v63_v4  ;;  %v54_v8 = vld [vmem:[#allocation2] sm:$0xff]  ;;  %v55_v10 = vld [vmem:[#allocation2 + $0x8] sm:$0xff]  ;;  %v56_v12 = vld [vmem:[#allocation2 + $0x10] sm:$0xff]  ;;  %s276_s22 = sshll.u32 %s486_s2, 4  ;;  %s277_s22 = int_to_ptr.vmem [resolvable:$true] %s276_s22 }
  0x3a   :  { %v58_v9 = vld [vmem:[#allocation2 + $0x20] sm:$0xff]  ;;  %v59_v11 = vld [vmem:[#allocation2 + $0x28] sm:$0xff]  ;;  %v60_v13 = vld [vmem:[#allocation2 + $0x30] sm:$0xff]  ;;  %s450_s23 = scalar_lea.vmem %s277_s22, 896  ;;  %p455_p11 = scmp.lt.s32.totalorder %s277_s22, %s277_s22 }
  0x3b   :  { %339 = vmatpush3.bf16.msra.mxu0 %v338_v5  ;;  %345 = vmatpush3.bf16.msra.mxu1 %v338_v5  ;;  %v57_v14 = vld [vmem:[#allocation2 + $0x18] sm:$0xff]  ;;  %p451_p10 = scmp.ne.s32.totalorder %s277_s22, %s450_s23  ;;  %p456_p12 = scmp.lt.s32.totalorder %s450_s23, %s450_s23 }
  0x3c   :  { %340 = vmatprep.subr.bf16.mxu0 %v483_v0  ;;  %344 = vmatprep.subr.bf16.mxu1 %v483_v0  ;;  %v289_v15 = vld [vmem:[#allocation7] ss:$0 sm:$0xff] }
  0x3d   :  { %p457_p13 = por %p456_p12, %p455_p11 }
  0x3f   :  { %342 = vmatpush3.bf16.msra.mxu0 %v341_v7  ;;  %346 = vmatpush3.bf16.msra.mxu1 %v341_v7  ;;  %p458_p0 = pnand %p457_p13, %p451_p10 }
  0x42   :  { %317 = vmatmul.mubr.msk.f32.vlgmr.msra.gmra.mrb[0].mxu0 %vm72_vm1, %v54_v8  ;;  %329 = vmatmul.mubr.msk.f32.vlgmr.msra.gmra.mrb[0].mxu1 %vm72_vm1, %v58_v9 }
  0x43   :  { %319 = vmatprep.mubr.msk.f32.mxu0 %vm484_vm0, %v485_v1  ;;  %331 = vmatprep.mubr.msk.f32.mxu1 %vm484_vm0, %v485_v1 }
  0x46   :  { %320 = vmatmul.mubr.msk.f32.gmra.mrb[2].mxu0 %vm72_vm1, %v55_v10  ;;  %332 = vmatmul.mubr.msk.f32.gmra.mrb[2].mxu1 %vm72_vm1, %v59_v11 }
  0x47   :  { %322 = vmatprep.mubr.msk.f32.mxu0 %vm484_vm0, %v485_v1  ;;  %334 = vmatprep.mubr.msk.f32.mxu1 %vm484_vm0, %v485_v1 }
  0x4a   :  { %323 = vmatmul.mubr.msk.f32.gmra.mrb[4].mxu0 %vm72_vm1, %v56_v12  ;;  %335 = vmatmul.mubr.msk.f32.gmra.mrb[4].mxu1 %vm72_vm1, %v60_v13 }
  0x4b   :  { %325 = vmatprep.mubr.msk.f32.mxu0 %vm484_vm0, %v485_v1 }
  0x4e   :  { %326 = vmatmul.mubr.msk.f32.gmra.mrb[6].mxu0 %vm72_vm1, %v57_v14 }
 0x115   :  { %v160_v16 = vpop.f32.mrb[0].mxu0  ;;  %v180_v17 = vpop.f32.mrb[0].mxu1 }
 0x116   :  { %v161_v18 = vadd.f32 %v289_v15, %v160_v16  ;;  %v318_v19 = vpop.f32.mrb[1].mxu0  ;;  %v330_v20 = vpop.f32.mrb[1].mxu1  ;;  %v181_v21 = vadd.f32 %v289_v15, %v180_v17 }
 0x118   :  { %194 = vmax.xlane.f32.xlu0 %v161_v18 }
 0x119   :  { %v165_v22 = vpop.f32.mrb[2].mxu0  ;;  %v185_v23 = vpop.f32.mrb[2].mxu1 }
 0x11a   :  { %v321_v24 = vpop.f32.mrb[3].mxu0  ;;  %v333_v25 = vpop.f32.mrb[3].mxu1  ;;  %v166_v28 = vadd.f32 %v289_v15, %v165_v22  ;;  %v186_v36 = vadd.f32 %v289_v15, %v185_v23 }
 0x11c   :  { %202 = vmax.xlane.f32.xlu0 %v181_v21 }
 0x11d   :  { %v170_v26 = vpop.f32.mrb[4].mxu0  ;;  %v190_v27 = vpop.f32.mrb[4].mxu1 }
 0x11e   :  { %v171_v29 = vadd.f32 %v289_v15, %v170_v26  ;;  %v324_v30 = vpop.f32.mrb[5].mxu0  ;;  %v336_v31 = vpop.f32.mrb[5].mxu1  ;;  %v191_v32 = vadd.f32 %v289_v15, %v190_v27 }
 0x120   :  { %196 = vmax.xlane.f32.xlu0 %v166_v28  ;;  %198 = vmax.xlane.f32.xlu1 %v171_v29 }
 0x121   :  { %v175_v33 = vpop.f32.mrb[6].mxu0 }
 0x122   :  { %v176_v34 = vadd.f32 %v289_v15, %v175_v33  ;;  %v327_v35 = vpop.f32.mrb[7].mxu0 }
 0x124   :  { %206 = vmax.xlane.f32.xlu0 %v191_v32  ;;  %200 = vmax.xlane.f32.xlu1 %v176_v34 }
 0x128   :  { %204 = vmax.xlane.f32.xlu1 %v186_v36 }
 0x1a5   :  { %v195_v37 = vpop.xlane.xlu0 %194 }
 0x1a6   :  { %v208_v38 = vsub.f32 %v161_v18, %v195_v37 }
 0x1a8   :  { %v215_v39 = vmul.f32 1.442695, %v208_v38 }
 0x1a9   :  { %v203_v40 = vpop.xlane.xlu0 %202 }
 0x1aa   :  { %356 = vpow2.f32 %v215_v39  ;;  %v212_v41 = vsub.f32 %v181_v21, %v203_v40 }
 0x1ac   :  { %v223_v42 = vmul.f32 1.442695, %v212_v41 }
 0x1ad   :  { %v197_v43 = vpop.xlane.xlu0 %196  ;;  %v199_v44 = vpop.xlane.xlu1 %198 }
 0x1ae   :  { %358 = vpow2.f32 %v223_v42  ;;  %v209_v45 = vsub.f32 %v166_v28, %v197_v43  ;;  %v210_v46 = vsub.f32 %v171_v29, %v199_v44 }
 0x1b0   :  { %v217_v47 = vmul.f32 1.442695, %v209_v45  ;;  %v219_v48 = vmul.f32 1.442695, %v210_v46 }
 0x1b1   :  { %v207_v49 = vpop.xlane.xlu0 %206  ;;  %v201_v50 = vpop.xlane.xlu1 %200 }
 0x1b2   :  { %360 = vpow2.f32 %v217_v47  ;;  %v570_v51 = vsub.f32 %v191_v32, %v207_v49  ;;  %v572_v52 = vsub.f32 %v176_v34, %v201_v50 }
 0x1b3   :  { %362 = vpow2.f32 %v219_v48 }
 0x1b4   :  { %v357_v53 = vpop.eup %356  ;;  %v227_v54 = vmul.f32 1.442695, %v570_v51  ;;  %v221_v55 = vmul.f32 1.442695, %v572_v52 }
 0x1b5   :  { %229 = vadd.xlane.f32.xlu1 %v357_v53  ;;  %v205_v56 = vpop.xlane.xlu1 %204 }
 0x1b6   :  { %364 = vpow2.f32 %v227_v54  ;;  %v213_v57 = vsub.f32 %v186_v36, %v205_v56 }
 0x1b7   :  { %366 = vpow2.f32 %v221_v55 }
 0x1b8   :  { %v359_v58 = vpop.eup %358  ;;  %v225_v59 = vmul.f32 1.442695, %v213_v57 }
 0x1b9   :  { %237 = vadd.xlane.f32.xlu1 %v359_v58 }
 0x1ba   :  { %368 = vpow2.f32 %v225_v59 }
 0x1bc   :  { %v361_v60 = vpop.eup %360 }
 0x1bd   :  { %v363_v61 = vpop.eup %362  ;;  %231 = vadd.xlane.f32.xlu0 %v361_v60 }
 0x1be   :  { %233 = vadd.xlane.f32.xlu1 %v363_v61 }
 0x1c0   :  { %v365_v62 = vpop.eup %364 }
 0x1c1   :  { %v367_v63 = vpop.eup %366 }
 0x1c2   :  { %241 = vadd.xlane.f32.xlu1 %v365_v62  ;;  %235 = vadd.xlane.f32.xlu0 %v367_v63 }
 0x1c4   :  { %v369_v0 = vpop.eup %368 }
 0x1c6   :  { %239 = vadd.xlane.f32.xlu0 %v369_v0 }
 0x242   :  { %v230_v1 = vpop.xlane.xlu1 %229 }
 0x243   :  { %370 = vlog2.f32 %v230_v1 }
 0x246   :  { %v238_v2 = vpop.xlane.xlu1 %237 }
 0x247   :  { %372 = vlog2.f32 %v238_v2 }
 0x24a   :  { %v232_v3 = vpop.xlane.xlu0 %231 }
 0x24b   :  { %374 = vlog2.f32 %v232_v3  ;;  %v234_v4 = vpop.xlane.xlu1 %233 }
 0x24c   :  { %376 = vlog2.f32 %v234_v4 }
 0x24d   :  { %v371_v5 = vpop.eup %370 }
 0x24e   :  { %v244_v6 = vmul.f32 0.6931472, %v371_v5 }
 0x24f   :  { %v236_v7 = vpop.xlane.xlu0 %235  ;;  %v242_v8 = vpop.xlane.xlu1 %241 }
 0x250   :  { %v257_v9 = vsub.f32 %v208_v38, %v244_v6  ;;  %378 = vlog2.f32 %v236_v7 }
 0x251   :  { %v373_v10 = vpop.eup %372  ;;  %380 = vlog2.f32 %v242_v8 }
 0x252   :  { %264 = vst [vmem:[#allocation8] sm:$0xff] %v257_v9  ;;  %v252_v11 = vmul.f32 0.6931472, %v373_v10 }
 0x253   :  { %v240_v12 = vpop.xlane.xlu0 %239 }
 0x254   :  { %v261_v13 = vsub.f32 %v212_v41, %v252_v11  ;;  %382 = vlog2.f32 %v240_v12 }
 0x255   :  { %v375_v14 = vpop.eup %374 }
 0x256   :  { %v377_v15 = vpop.eup %376  ;;  %268 = vst [vmem:[#allocation8 + $0x20] sm:$0xff] %v261_v13  ;;  %v246_v16 = vmul.f32 0.6931472, %v375_v14 }
 0x257   :  { %v248_v17 = vmul.f32 0.6931472, %v377_v15 }
 0x258   :  { %v258_v18 = vsub.f32 %v209_v45, %v246_v16 }
 0x259   :  { %v259_v19 = vsub.f32 %v210_v46, %v248_v17 }
 0x25a   :  { %v379_v20 = vpop.eup %378  ;;  %265 = vst [vmem:[#allocation8 + $0x8] sm:$0xff] %v258_v18 }
 0x25b   :  { %v381_v21 = vpop.eup %380  ;;  %266 = vst [vmem:[#allocation8 + $0x10] sm:$0xff] %v259_v19  ;;  %v250_v22 = vmul.f32 0.6931472, %v379_v20 }
 0x25c   :  { %v256_v23 = vmul.f32 0.6931472, %v381_v21 }
 0x25d   :  { %v260_v24 = vsub.f32 %v572_v52, %v250_v22 }
 0x25e   :  { %v383_v25 = vpop.eup %382  ;;  %v263_v26 = vsub.f32 %v570_v51, %v256_v23 }
 0x25f   :  { %267 = vst [vmem:[#allocation8 + $0x18] sm:$0xff] %v260_v24  ;;  %v254_v27 = vmul.f32 0.6931472, %v383_v25 }
 0x260   :  { %270 = vst [vmem:[#allocation8 + $0x30] sm:$0xff] %v263_v26 }
 0x261   :  { %v262_v28 = vsub.f32 %v213_v57, %v254_v27 }
 0x263   :  { %269 = vst [vmem:[#allocation8 + $0x28] sm:$0xff] %v262_v28 }
 0x264   :  { %461 = shalt.err (!%p458_p0)
}
 0x265   :  { %s462_s28 = scalar_lea.hbm %s596_s3, 896 }
 0x266   :  { %p463_p1 = scmp.ne.s32.totalorder %s596_s3, %s462_s28  ;;  %p466_p2 = scmp.lt.u32.totalorder %s462_s28, %s596_s3 }
 0x268   :  { %p468_p3 = pnand %p466_p2, %p463_p1 }
 0x26a   :  { %471 = shalt.err (!%p468_p3)
}
 0x26b   :  { %282 = dma.vmem_to_hbm [thread:$0]  %s277_s22, 896, %s596_s3, [#allocation4], %s480_s24, %s480_s24, %s481_s25  }
 0x26c   :  { %476 = dma.done.wait [#allocation4], 896  }
 0x26d   :  { %477 = vsyncadd [#allocation4], 4294966400 }
 0x26e   :  { %286 = vsyncpa [#allocation3], 1 }
 0x26f   :  { %287 = vsyncpa [#allocation6], 1 }
 0x270   :  { %288 = vsyncpa [#allocation4], 1 }

// kernel: encoder_decoder_forward.2
= control target key start
LH: loop header
LB: loop body
LE: loop exit
PB: predicated region body
PF: predicated region fallthrough
CT: control target
= control target key end

     0   :  { %7 = vsyncpa [#allocation3], 0  ;;  %s1338_s0 = inlined_call_operand.hbm [shape: f32[8,8,160], index: 0, kind: input, shape index: {}]   ;;  %s1339_s1 = inlined_call_operand.hbm [shape: f32[32,160], index: 1, kind: input, shape index: {}]   ;;  %s1340_s2 = inlined_call_operand.hbm [shape: f32[8,8,32], index: 2, kind: output, shape index: {}]  }
   0x1   :  { %8 = vsyncpa [#allocation6], 0 }
   0x2   :  { %9 = vsyncpa [#allocation4], 0  ;;  %s1172_s9 = smov [#allocation2]   ;;  %s1100_s13 = scalar_lea.hbm %s1338_s0, 2048 }
   0x3   :  { %s15_s10 = sshll.u32 %s1172_s9, 4  ;;  %p1101_p0 = scmp.ne.s32.totalorder %s1338_s0, %s1100_s13  ;;  %s16_s10 = int_to_ptr.vmem [resolvable:$true] %s15_s10 }
   0x4   :  { %p1104_p1 = scmp.lt.u32.totalorder %s1100_s13, %s1338_s0 }
   0x6   :  { %p1106_p2 = pnand %p1104_p1, %p1101_p0 }
   0x8   :  { %1109 = shalt.err (!%p1106_p2)
}
   0x9   :  { %s1110_s18 = scalar_lea.vmem %s16_s10, 2048  ;;  %p1115_p4 = scmp.lt.s32.totalorder %s16_s10, %s16_s10 }
   0xa   :  { %p1111_p3 = scmp.ne.s32.totalorder %s16_s10, %s1110_s18  ;;  %p1116_p5 = scmp.lt.s32.totalorder %s1110_s18, %s1110_s18 }
   0xc   :  { %p1117_p6 = por %p1116_p5, %p1115_p4 }
   0xe   :  { %p1118_p7 = pnand %p1117_p6, %p1111_p3 }
  0x10   :  { %1121 = shalt.err (!%p1118_p7)
}
  0x11   :  { %s1173_s19 = smov 256   ;;  %s1174_s20 = smov 16  }
  0x12   :  { %21 = dma.hbm_to_vmem [thread:$0]  %s1338_s0, 2048, %s16_s10, [#allocation3], %s1173_s19, %s1173_s19, %s1174_s20  }
  0x13   :  { %s1175_s23 = smov [#allocation5]   ;;  %s1122_s27 = scalar_lea.hbm %s1339_s1, 1024 }
  0x14   :  { %s27_s24 = sshll.u32 %s1175_s23, 4  ;;  %p1123_p8 = scmp.ne.s32.totalorder %s1339_s1, %s1122_s27  ;;  %s28_s24 = int_to_ptr.vmem [resolvable:$true] %s27_s24 }
  0x15   :  { %p1126_p9 = scmp.lt.u32.totalorder %s1122_s27, %s1339_s1 }
  0x17   :  { %p1128_p10 = pnand %p1126_p9, %p1123_p8 }
  0x19   :  { %1131 = shalt.err (!%p1128_p10)
}
  0x1a   :  { %s1132_s4 = scalar_lea.vmem %s28_s24, 1024  ;;  %p1137_p12 = scmp.lt.s32.totalorder %s28_s24, %s28_s24 }
  0x1b   :  { %p1133_p11 = scmp.ne.s32.totalorder %s28_s24, %s1132_s4  ;;  %p1138_p13 = scmp.lt.s32.totalorder %s1132_s4, %s1132_s4 }
  0x1d   :  { %p1139_p0 = por %p1138_p13, %p1137_p12 }
  0x1f   :  { %p1140_p1 = pnand %p1139_p0, %p1133_p11 }
  0x21   :  { %1143 = shalt.err (!%p1140_p1)
}
  0x22   :  { %33 = dma.hbm_to_vmem [thread:$0]  %s1339_s1, 1024, %s28_s24, [#allocation6], %s1173_s19, %s1173_s19, %s1174_s20  }
  0x23   :  { %1166 = dma.done.wait [#allocation3], 2048  }
  0x24   :  { %1167 = vsyncadd [#allocation3], 4294965248 }
  0x25   :  { %1168 = dma.done.wait [#allocation6], 1024  }
  0x26   :  { %1169 = vsyncadd [#allocation6], 4294966272  ;;  %v1176_v0 = vmov 0.0   ;;  %v41_v1 = vld [vmem:[#allocation5 + $0x8] sm:$0xff]  ;;  %v43_v2 = vld [vmem:[#allocation5 + $0x18] sm:$0xff]  ;;  %s1177_s1 = smov 96  }
  0x27   :  { %118 = vmatprep.mubr.f32.mxu0 %v1176_v0  ;;  %229 = vmatprep.mubr.f32.mxu1 %v1176_v0  ;;  %v40_v3 = vld [vmem:[#allocation5] sm:$0xff]  ;;  %v1224_v4 = vpack.c.bf16 %v43_v2, %v41_v1  ;;  %v42_v5 = vld [vmem:[#allocation5 + $0x10] sm:$0xff]  ;;  %v45_v6 = vld [vmem:[#allocation5 + $0x28] sm:$0xff]  ;;  %s1178_s6 = smov 32   ;;  %s1179_s7 = smov 64   ;;  %vm50_vm0 = vcmask 261120  }
  0x28   :  { %v47_v7 = vld [vmem:[#allocation5 + $0x38] sm:$0xff]  ;;  %v1226_v8 = vpack.c.bf16 %v42_v5, %v40_v3  ;;  %v44_v10 = vld [vmem:[#allocation5 + $0x20] sm:$0xff]  ;;  %v46_v11 = vld [vmem:[#allocation5 + $0x30] sm:$0xff]  ;;  %s1180_s8 = smov [#allocation7]  }
  0x29   :  { %v1228_v9 = vpack.c.bf16 %v47_v7, %v45_v6  ;;  %978 = vmatprep.subr.bf16.mxu0 %v1224_v4  ;;  %986 = vmatprep.subr.bf16.mxu1 %v1224_v4  ;;  %v1233_v12 = vpack.c.bf16 %v46_v11, %v44_v10  ;;  %v49_v13 = vld [vmem:[#allocation2 + $0x8] sm:$0xff]  ;;  %v48_v17 = vld [vmem:[#allocation2] sm:$0xff]  ;;  %v162_v34 = vld [vmem:[#allocation2 + $0x18] sm:$0xff]  ;;  %s949_s9 = sshll.u32 %s1180_s8, 4  ;;  %s950_s9 = int_to_ptr.vmem [resolvable:$true] %s949_s9 }
  0x2a   :  { %980 = vmatpush1.bf16.msra.mxu0 %v1226_v8  ;;  %988 = vmatpush1.bf16.msra.mxu1 %v1226_v8  ;;  %v161_v38 = vld [vmem:[#allocation2 + $0x10] sm:$0xff]  ;;  %v274_v55 = vld [vmem:[#allocation2 + $0x28] sm:$0xff]  ;;  %v273_v59 = vld [vmem:[#allocation2 + $0x20] sm:$0xff]  ;;  %s1144_s10 = scalar_lea.vmem %s950_s9, 1024  ;;  %p1149_p3 = scmp.lt.s32.totalorder %s950_s9, %s950_s9 }
  0x2b   :  { %982 = vmatprep.subr.bf16.mxu0 %v1228_v9  ;;  %990 = vmatprep.subr.bf16.mxu1 %v1228_v9  ;;  %p1145_p2 = scmp.ne.s32.totalorder %s950_s9, %s1144_s10  ;;  %p1150_p4 = scmp.lt.s32.totalorder %s1144_s10, %s1144_s10 }
  0x2d   :  { %p1151_p5 = por %p1150_p4, %p1149_p3 }
  0x2e   :  { %984 = vmatpush1.bf16.msra.mxu0 %v1233_v12  ;;  %992 = vmatpush1.bf16.msra.mxu1 %v1233_v12 }
  0x2f   :  { %994 = vmatprep.subr.bf16.mxu0 %v1224_v4  ;;  %1002 = vmatprep.subr.bf16.mxu1 %v1224_v4  ;;  %p1152_p6 = pnand %p1151_p5, %p1145_p2 }
  0x31   :  { %119 = vmatmul.mubr.f32.vlgmr.msra.gmra.mrb[0].mxu0 %v1176_v0 }
  0x32   :  { %996 = vmatpush1.bf16.msra.mxu0 %v1226_v8  ;;  %341 = vmatprep.mubr.f32.mxu0 %v1176_v0 }
  0x33   :  { %998 = vmatprep.subr.bf16.mxu0 %v1228_v9 }
  0x36   :  { %1000 = vmatpush1.bf16.msra.mxu0 %v1233_v12 }
  0x37   :  { %1010 = vmatprep.subr.bf16.mxu0 %v1224_v4 }
 0x104   :  { %v120_v14 = vpop.f32.mrb[0].mxu0 }
 0x105   :  { %v122_v15 = vpop.f32.mrb[1].mxu0  ;;  %v125_v18 = vadd.f32 %v120_v14, %v48_v17  ;;  %v386_v17 = vld [vmem:[#allocation2 + $0x38] sm:$0xff] }
 0x106   :  { %v126_v16 = vadd.f32 %v122_v15, %v49_v13 }
 0x107   :  { %v962_v21 = vmul.f32 -1.442695, %v125_v18 }
 0x108   :  { %134 = vrot.lane.b32.xlu0 %v126_v16, %s1177_s1 }
 0x109   :  { %1052 = vpow2.f32 %v962_v21  ;;  %v385_v21 = vld [vmem:[#allocation2 + $0x30] sm:$0xff] }
 0x113   :  { %v1053_v22 = vpop.eup %1052 }
 0x114   :  { %v130_v23 = vadd.f32 1.0, %v1053_v22 }
 0x116   :  { %1054 = vrcp.f32 %v130_v23 }
 0x120   :  { %v1055_v24 = vpop.eup %1054 }
 0x121   :  { %v138_v27 = vmul.f32 0.0, %v1055_v24 }
 0x17a   :  { %v135_v19 = vpop.permute.xlu0 %134 }
 0x17b   :  { %v137_v20 = vmax.f32 %v125_v18, %v135_v19 }
 0x17d   :  { %140 = vrot.lane.b32.xlu0 %v137_v20, %s1178_s6 }
 0x1ef   :  { %v141_v25 = vpop.permute.xlu0 %140 }
 0x1f0   :  { %v143_v26 = vmul.f32 %v1055_v24, %v141_v25 }
 0x1f2   :  { %145 = vrot.lane.b32.xlu1 %v143_v26, %s1178_s6 }
 0x264   :  { %v146_v28 = vpop.permute.xlu1 %145 }
 0x265   :  { %v148_v29 = vadd.f32 %v146_v28, %v138_v27 }
 0x267   :  { %1056 = vtanh.f32 %v148_v29 }
 0x271   :  { %v1057_v30 = vpop.eup %1056 }
 0x272   :  { %151 = vrot.lane.b32.xlu1 %v1057_v30, %s1178_s6 }
 0x2e4   :  { %v152_v31 = vpop.permute.xlu1 %151 }
 0x2e5   :  { %v154_v32 = vmul.f32 %v1055_v24, %v152_v31 }
 0x2e7   :  { %156 = vrot.lane.b32.xlu0 %v154_v32, %s1179_s7 }
 0x359   :  { %v157_v33 = vpop.permute.xlu0 %156 }
 0x35a   :  { %159 = vst.msk [vmem:[#allocation7] sm:$0xff] %vm50_vm0, %v157_v33  ;;  %963 = vmatmul.mubr.msk.f32.vlgmr.msra.gmra.mrb[0].mxu1 %vm50_vm0, %v157_v33 }
 0x35b   :  { %1004 = vmatpush1.bf16.msra.mxu1 %v1226_v8  ;;  %453 = vmatprep.mubr.f32.mxu1 %v1176_v0 }
 0x35c   :  { %1006 = vmatprep.subr.bf16.mxu1 %v1228_v9 }
 0x35f   :  { %1008 = vmatpush1.bf16.msra.mxu1 %v1233_v12 }
 0x360   :  { %1018 = vmatprep.subr.bf16.mxu1 %v1224_v4 }
 0x42d   :  { %v231_v35 = vpop.f32.mrb[0].mxu1 }
 0x42e   :  { %v233_v36 = vpop.f32.mrb[1].mxu1  ;;  %v236_v39 = vadd.f32 %v231_v35, %v161_v38 }
 0x42f   :  { %v237_v37 = vadd.f32 %v233_v36, %v162_v34 }
 0x430   :  { %v964_v42 = vmul.f32 -1.442695, %v236_v39 }
 0x431   :  { %245 = vrot.lane.b32.xlu1 %v237_v37, %s1177_s1  ;;  %v498_v37 = vld [vmem:[#allocation2 + $0x48] sm:$0xff] }
 0x432   :  { %1058 = vpow2.f32 %v964_v42 }
 0x43c   :  { %v1059_v43 = vpop.eup %1058 }
 0x43d   :  { %v241_v44 = vadd.f32 1.0, %v1059_v43 }
 0x43f   :  { %1060 = vrcp.f32 %v241_v44 }
 0x449   :  { %v1061_v45 = vpop.eup %1060 }
 0x44a   :  { %v249_v48 = vmul.f32 %v1061_v45, %v148_v29 }
 0x4a3   :  { %v246_v40 = vpop.permute.xlu1 %245 }
 0x4a4   :  { %v248_v41 = vmax.f32 %v236_v39, %v246_v40 }
 0x4a6   :  { %251 = vrot.lane.b32.xlu0 %v248_v41, %s1178_s6  ;;  %v497_v41 = vld [vmem:[#allocation2 + $0x40] sm:$0xff] }
 0x518   :  { %v252_v46 = vpop.permute.xlu0 %251 }
 0x519   :  { %v254_v47 = vmul.f32 %v1061_v45, %v252_v46 }
 0x51b   :  { %256 = vrot.lane.b32.xlu1 %v254_v47, %s1178_s6 }
 0x58d   :  { %v257_v49 = vpop.permute.xlu1 %256 }
 0x58e   :  { %v259_v50 = vadd.f32 %v257_v49, %v249_v48 }
 0x590   :  { %1062 = vtanh.f32 %v259_v50 }
 0x59a   :  { %v1063_v51 = vpop.eup %1062 }
 0x59b   :  { %262 = vrot.lane.b32.xlu0 %v1063_v51, %s1178_s6 }
 0x60d   :  { %v263_v52 = vpop.permute.xlu0 %262 }
 0x60e   :  { %v265_v53 = vmul.f32 %v1061_v45, %v263_v52 }
 0x610   :  { %267 = vrot.lane.b32.xlu1 %v265_v53, %s1179_s7 }
 0x682   :  { %v268_v54 = vpop.permute.xlu1 %267 }
 0x683   :  { %271 = vst.msk [vmem:[#allocation7 + $0x8] sm:$0xff] %vm50_vm0, %v268_v54  ;;  %965 = vmatmul.mubr.msk.f32.vlgmr.msra.gmra.mrb[2].mxu0 %vm50_vm0, %v268_v54 }
 0x684   :  { %1012 = vmatpush1.bf16.msra.mxu0 %v1226_v8  ;;  %565 = vmatprep.mubr.f32.mxu0 %v1176_v0 }
 0x685   :  { %1014 = vmatprep.subr.bf16.mxu0 %v1228_v9 }
 0x688   :  { %1016 = vmatpush1.bf16.msra.mxu0 %v1233_v12 }
 0x689   :  { %1026 = vmatprep.subr.bf16.mxu0 %v1224_v4 }
 0x756   :  { %v343_v56 = vpop.f32.mrb[2].mxu0 }
 0x757   :  { %v345_v57 = vpop.f32.mrb[3].mxu0  ;;  %v348_v60 = vadd.f32 %v343_v56, %v273_v59 }
 0x758   :  { %v349_v58 = vadd.f32 %v345_v57, %v274_v55 }
 0x759   :  { %v966_v63 = vmul.f32 -1.442695, %v348_v60 }
 0x75a   :  { %357 = vrot.lane.b32.xlu0 %v349_v58, %s1177_s1  ;;  %v610_v58 = vld [vmem:[#allocation2 + $0x58] sm:$0xff] }
 0x75b   :  { %1064 = vpow2.f32 %v966_v63 }
 0x765   :  { %v1065_v1 = vpop.eup %1064 }
 0x766   :  { %v353_v2 = vadd.f32 1.0, %v1065_v1 }
 0x768   :  { %1066 = vrcp.f32 %v353_v2 }
 0x772   :  { %v1067_v3 = vpop.eup %1066 }
 0x773   :  { %v361_v7 = vmul.f32 %v1067_v3, %v259_v50 }
 0x7cc   :  { %v358_v61 = vpop.permute.xlu0 %357 }
 0x7cd   :  { %v360_v62 = vmax.f32 %v348_v60, %v358_v61 }
 0x7cf   :  { %363 = vrot.lane.b32.xlu1 %v360_v62, %s1178_s6  ;;  %v609_v62 = vld [vmem:[#allocation2 + $0x50] sm:$0xff] }
 0x841   :  { %v364_v5 = vpop.permute.xlu1 %363 }
 0x842   :  { %v366_v6 = vmul.f32 %v1067_v3, %v364_v5 }
 0x844   :  { %368 = vrot.lane.b32.xlu0 %v366_v6, %s1178_s6 }
 0x8b6   :  { %v369_v10 = vpop.permute.xlu0 %368 }
 0x8b7   :  { %v371_v11 = vadd.f32 %v369_v10, %v361_v7 }
 0x8b9   :  { %1068 = vtanh.f32 %v371_v11 }
 0x8c3   :  { %v1069_v13 = vpop.eup %1068 }
 0x8c4   :  { %374 = vrot.lane.b32.xlu1 %v1069_v13, %s1178_s6 }
 0x936   :  { %v375_v14 = vpop.permute.xlu1 %374 }
 0x937   :  { %v377_v15 = vmul.f32 %v1067_v3, %v375_v14 }
 0x939   :  { %379 = vrot.lane.b32.xlu0 %v377_v15, %s1179_s7 }
 0x9ab   :  { %v380_v16 = vpop.permute.xlu0 %379 }
 0x9ac   :  { %383 = vst.msk [vmem:[#allocation7 + $0x10] sm:$0xff] %vm50_vm0, %v380_v16  ;;  %967 = vmatmul.mubr.msk.f32.vlgmr.msra.gmra.mrb[2].mxu1 %vm50_vm0, %v380_v16  ;;  %v722_v16 = vld [vmem:[#allocation2 + $0x68] sm:$0xff] }
 0x9ad   :  { %1020 = vmatpush1.bf16.msra.mxu1 %v1226_v8  ;;  %677 = vmatprep.mubr.f32.mxu1 %v1176_v0 }
 0x9ae   :  { %1022 = vmatprep.subr.bf16.mxu1 %v1228_v9 }
 0x9b1   :  { %1024 = vmatpush1.bf16.msra.mxu1 %v1233_v12 }
 0x9b2   :  { %1034 = vmatprep.subr.bf16.mxu1 %v1224_v4 }
 0xa7f   :  { %v455_v18 = vpop.f32.mrb[2].mxu1 }
 0xa80   :  { %v457_v19 = vpop.f32.mrb[3].mxu1  ;;  %v460_v22 = vadd.f32 %v455_v18, %v385_v21 }
 0xa81   :  { %v461_v20 = vadd.f32 %v457_v19, %v386_v17 }
 0xa82   :  { %v968_v25 = vmul.f32 -1.442695, %v460_v22 }
 0xa83   :  { %469 = vrot.lane.b32.xlu1 %v461_v20, %s1177_s1  ;;  %v721_v20 = vld [vmem:[#allocation2 + $0x60] sm:$0xff] }
 0xa84   :  { %1070 = vpow2.f32 %v968_v25 }
 0xa8e   :  { %v1071_v26 = vpop.eup %1070 }
 0xa8f   :  { %v465_v27 = vadd.f32 1.0, %v1071_v26 }
 0xa91   :  { %1072 = vrcp.f32 %v465_v27 }
 0xa9b   :  { %v1073_v28 = vpop.eup %1072 }
 0xa9c   :  { %v473_v30 = vmul.f32 %v1073_v28, %v371_v11 }
 0xaf5   :  { %v470_v23 = vpop.permute.xlu1 %469 }
 0xaf6   :  { %v472_v24 = vmax.f32 %v460_v22, %v470_v23 }
 0xaf8   :  { %475 = vrot.lane.b32.xlu0 %v472_v24, %s1178_s6 }
 0xb6a   :  { %v476_v29 = vpop.permute.xlu0 %475 }
 0xb6b   :  { %v478_v4 = vmul.f32 %v1073_v28, %v476_v29 }
 0xb6d   :  { %480 = vrot.lane.b32.xlu1 %v478_v4, %s1178_s6 }
 0xbdf   :  { %v481_v31 = vpop.permute.xlu1 %480 }
 0xbe0   :  { %v483_v32 = vadd.f32 %v481_v31, %v473_v30 }
 0xbe2   :  { %1074 = vtanh.f32 %v483_v32 }
 0xbec   :  { %v1075_v33 = vpop.eup %1074 }
 0xbed   :  { %486 = vrot.lane.b32.xlu0 %v1075_v33, %s1178_s6 }
 0xc5f   :  { %v487_v34 = vpop.permute.xlu0 %486 }
 0xc60   :  { %v489_v35 = vmul.f32 %v1073_v28, %v487_v34 }
 0xc62   :  { %491 = vrot.lane.b32.xlu1 %v489_v35, %s1179_s7 }
 0xcd4   :  { %v492_v36 = vpop.permute.xlu1 %491 }
 0xcd5   :  { %495 = vst.msk [vmem:[#allocation7 + $0x18] sm:$0xff] %vm50_vm0, %v492_v36  ;;  %969 = vmatmul.mubr.msk.f32.vlgmr.msra.gmra.mrb[4].mxu0 %vm50_vm0, %v492_v36  ;;  %v834_v36 = vld [vmem:[#allocation2 + $0x78] sm:$0xff] }
 0xcd6   :  { %1028 = vmatpush1.bf16.msra.mxu0 %v1226_v8  ;;  %789 = vmatprep.mubr.f32.mxu0 %v1176_v0 }
 0xcd7   :  { %1030 = vmatprep.subr.bf16.mxu0 %v1228_v9 }
 0xcda   :  { %1032 = vmatpush1.bf16.msra.mxu0 %v1233_v12 }
 0xda8   :  { %v567_v38 = vpop.f32.mrb[4].mxu0 }
 0xda9   :  { %v569_v39 = vpop.f32.mrb[5].mxu0  ;;  %v572_v42 = vadd.f32 %v567_v38, %v497_v41 }
 0xdaa   :  { %v573_v40 = vadd.f32 %v569_v39, %v498_v37 }
 0xdab   :  { %v970_v45 = vmul.f32 -1.442695, %v572_v42 }
 0xdac   :  { %581 = vrot.lane.b32.xlu0 %v573_v40, %s1177_s1  ;;  %v833_v40 = vld [vmem:[#allocation2 + $0x70] sm:$0xff] }
 0xdad   :  { %1076 = vpow2.f32 %v970_v45 }
 0xdb7   :  { %v1077_v46 = vpop.eup %1076 }
 0xdb8   :  { %v577_v47 = vadd.f32 1.0, %v1077_v46 }
 0xdba   :  { %1078 = vrcp.f32 %v577_v47 }
 0xdc4   :  { %v1079_v48 = vpop.eup %1078 }
 0xdc5   :  { %v585_v51 = vmul.f32 %v1079_v48, %v483_v32 }
 0xe1e   :  { %v582_v43 = vpop.permute.xlu0 %581 }
 0xe1f   :  { %v584_v44 = vmax.f32 %v572_v42, %v582_v43 }
 0xe21   :  { %587 = vrot.lane.b32.xlu1 %v584_v44, %s1178_s6 }
 0xe93   :  { %v588_v49 = vpop.permute.xlu1 %587 }
 0xe94   :  { %v590_v50 = vmul.f32 %v1079_v48, %v588_v49 }
 0xe96   :  { %592 = vrot.lane.b32.xlu0 %v590_v50, %s1178_s6 }
 0xf08   :  { %v593_v52 = vpop.permute.xlu0 %592 }
 0xf09   :  { %v595_v53 = vadd.f32 %v593_v52, %v585_v51 }
 0xf0b   :  { %1080 = vtanh.f32 %v595_v53 }
 0xf15   :  { %v1081_v54 = vpop.eup %1080 }
 0xf16   :  { %598 = vrot.lane.b32.xlu1 %v1081_v54, %s1178_s6 }
 0xf88   :  { %v599_v55 = vpop.permute.xlu1 %598 }
 0xf89   :  { %v601_v56 = vmul.f32 %v1079_v48, %v599_v55 }
 0xf8b   :  { %603 = vrot.lane.b32.xlu0 %v601_v56, %s1179_s7 }
 0xffd   :  { %v604_v57 = vpop.permute.xlu0 %603 }
 0xffe   :  { %607 = vst.msk [vmem:[#allocation7 + $0x20] sm:$0xff] %vm50_vm0, %v604_v57  ;;  %971 = vmatmul.mubr.msk.f32.vlgmr.msra.gmra.mrb[4].mxu1 %vm50_vm0, %v604_v57 }
 0xfff   :  { %1036 = vmatpush1.bf16.msra.mxu1 %v1226_v8  ;;  %901 = vmatprep.mubr.f32.mxu1 %v1176_v0 }
0x1000   :  { %1038 = vmatprep.subr.bf16.mxu1 %v1228_v9 }
0x1003   :  { %1040 = vmatpush1.bf16.msra.mxu1 %v1233_v12 }
0x10d1   :  { %v679_v59 = vpop.f32.mrb[4].mxu1 }
0x10d2   :  { %v681_v60 = vpop.f32.mrb[5].mxu1  ;;  %v684_v63 = vadd.f32 %v679_v59, %v609_v62 }
0x10d3   :  { %v685_v61 = vadd.f32 %v681_v60, %v610_v58 }
0x10d4   :  { %v972_v3 = vmul.f32 -1.442695, %v684_v63 }
0x10d5   :  { %693 = vrot.lane.b32.xlu1 %v685_v61, %s1177_s1 }
0x10d6   :  { %1082 = vpow2.f32 %v972_v3 }
0x10e0   :  { %v1083_v8 = vpop.eup %1082 }
0x10e1   :  { %v689_v0 = vadd.f32 1.0, %v1083_v8 }
0x10e3   :  { %1084 = vrcp.f32 %v689_v0 }
0x10ed   :  { %v1085_v9 = vpop.eup %1084 }
0x10ee   :  { %v697_v6 = vmul.f32 %v1085_v9, %v595_v53 }
0x1147   :  { %v694_v1 = vpop.permute.xlu1 %693 }
0x1148   :  { %v696_v2 = vmax.f32 %v684_v63, %v694_v1 }
0x114a   :  { %699 = vrot.lane.b32.xlu0 %v696_v2, %s1178_s6 }
0x11bc   :  { %v700_v5 = vpop.permute.xlu0 %699 }
0x11bd   :  { %v702_v12 = vmul.f32 %v1085_v9, %v700_v5 }
0x11bf   :  { %704 = vrot.lane.b32.xlu1 %v702_v12, %s1178_s6 }
0x1231   :  { %v705_v7 = vpop.permute.xlu1 %704 }
0x1232   :  { %v707_v10 = vadd.f32 %v705_v7, %v697_v6 }
0x1234   :  { %1086 = vtanh.f32 %v707_v10 }
0x123e   :  { %v1087_v11 = vpop.eup %1086 }
0x123f   :  { %710 = vrot.lane.b32.xlu0 %v1087_v11, %s1178_s6 }
0x12b1   :  { %v711_v13 = vpop.permute.xlu0 %710 }
0x12b2   :  { %v713_v14 = vmul.f32 %v1085_v9, %v711_v13 }
0x12b4   :  { %715 = vrot.lane.b32.xlu1 %v713_v14, %s1179_s7 }
0x1326   :  { %v716_v15 = vpop.permute.xlu1 %715 }
0x1327   :  { %719 = vst.msk [vmem:[#allocation7 + $0x28] sm:$0xff] %vm50_vm0, %v716_v15  ;;  %973 = vmatmul.mubr.msk.f32.vlgmr.msra.gmra.mrb[6].mxu0 %vm50_vm0, %v716_v15 }
0x13fa   :  { %v791_v17 = vpop.f32.mrb[6].mxu0 }
0x13fb   :  { %v793_v18 = vpop.f32.mrb[7].mxu0  ;;  %v796_v21 = vadd.f32 %v791_v17, %v721_v20 }
0x13fc   :  { %v797_v19 = vadd.f32 %v793_v18, %v722_v16 }
0x13fd   :  { %v974_v24 = vmul.f32 -1.442695, %v796_v21 }
0x13fe   :  { %805 = vrot.lane.b32.xlu0 %v797_v19, %s1177_s1 }
0x13ff   :  { %1088 = vpow2.f32 %v974_v24 }
0x1409   :  { %v1089_v25 = vpop.eup %1088 }
0x140a   :  { %v801_v26 = vadd.f32 1.0, %v1089_v25 }
0x140c   :  { %1090 = vrcp.f32 %v801_v26 }
0x1416   :  { %v1091_v27 = vpop.eup %1090 }
0x1417   :  { %v809_v4 = vmul.f32 %v1091_v27, %v707_v10 }
0x1470   :  { %v806_v22 = vpop.permute.xlu0 %805 }
0x1471   :  { %v808_v23 = vmax.f32 %v796_v21, %v806_v22 }
0x1473   :  { %811 = vrot.lane.b32.xlu1 %v808_v23, %s1178_s6 }
0x14e5   :  { %v812_v28 = vpop.permute.xlu1 %811 }
0x14e6   :  { %v814_v29 = vmul.f32 %v1091_v27, %v812_v28 }
0x14e8   :  { %816 = vrot.lane.b32.xlu0 %v814_v29, %s1178_s6 }
0x155a   :  { %v817_v30 = vpop.permute.xlu0 %816 }
0x155b   :  { %v819_v31 = vadd.f32 %v817_v30, %v809_v4 }
0x155d   :  { %1092 = vtanh.f32 %v819_v31 }
0x1567   :  { %v1093_v32 = vpop.eup %1092 }
0x1568   :  { %822 = vrot.lane.b32.xlu1 %v1093_v32, %s1178_s6 }
0x15da   :  { %v823_v33 = vpop.permute.xlu1 %822 }
0x15db   :  { %v825_v34 = vmul.f32 %v1091_v27, %v823_v33 }
0x15dd   :  { %827 = vrot.lane.b32.xlu0 %v825_v34, %s1179_s7 }
0x164f   :  { %v828_v35 = vpop.permute.xlu0 %827 }
0x1650   :  { %831 = vst.msk [vmem:[#allocation7 + $0x30] sm:$0xff] %vm50_vm0, %v828_v35  ;;  %975 = vmatmul.mubr.msk.f32.vlgmr.msra.gmra.mrb[6].mxu1 %vm50_vm0, %v828_v35 }
0x1723   :  { %v903_v37 = vpop.f32.mrb[6].mxu1 }
0x1724   :  { %v905_v38 = vpop.f32.mrb[7].mxu1  ;;  %v908_v41 = vadd.f32 %v903_v37, %v833_v40 }
0x1725   :  { %v909_v39 = vadd.f32 %v905_v38, %v834_v36 }
0x1726   :  { %v976_v44 = vmul.f32 -1.442695, %v908_v41 }
0x1727   :  { %917 = vrot.lane.b32.xlu1 %v909_v39, %s1177_s1 }
0x1728   :  { %1094 = vpow2.f32 %v976_v44 }
0x1732   :  { %v1095_v45 = vpop.eup %1094 }
0x1733   :  { %v913_v46 = vadd.f32 1.0, %v1095_v45 }
0x1735   :  { %1096 = vrcp.f32 %v913_v46 }
0x173f   :  { %v1097_v47 = vpop.eup %1096 }
0x1740   :  { %v921_v50 = vmul.f32 %v1097_v47, %v819_v31 }
0x1799   :  { %v918_v42 = vpop.permute.xlu1 %917 }
0x179a   :  { %v920_v43 = vmax.f32 %v908_v41, %v918_v42 }
0x179c   :  { %923 = vrot.lane.b32.xlu0 %v920_v43, %s1178_s6 }
0x180e   :  { %v924_v48 = vpop.permute.xlu0 %923 }
0x180f   :  { %v926_v49 = vmul.f32 %v1097_v47, %v924_v48 }
0x1811   :  { %928 = vrot.lane.b32.xlu1 %v926_v49, %s1178_s6 }
0x1883   :  { %v929_v51 = vpop.permute.xlu1 %928 }
0x1884   :  { %v931_v52 = vadd.f32 %v929_v51, %v921_v50 }
0x1886   :  { %1098 = vtanh.f32 %v931_v52 }
0x1890   :  { %v1099_v53 = vpop.eup %1098 }
0x1891   :  { %934 = vrot.lane.b32.xlu0 %v1099_v53, %s1178_s6 }
0x1903   :  { %v935_v54 = vpop.permute.xlu0 %934 }
0x1904   :  { %v937_v55 = vmul.f32 %v1097_v47, %v935_v54 }
0x1906   :  { %939 = vrot.lane.b32.xlu1 %v937_v55, %s1179_s7 }
0x1978   :  { %v940_v56 = vpop.permute.xlu1 %939 }
0x1979   :  { %943 = vst.msk [vmem:[#allocation7 + $0x38] sm:$0xff] %vm50_vm0, %v940_v56 }
0x197a   :  { %1155 = shalt.err (!%p1152_p6)
}
0x197b   :  { %s1156_s13 = scalar_lea.hbm %s1340_s2, 1024 }
0x197c   :  { %p1157_p7 = scmp.ne.s32.totalorder %s1340_s2, %s1156_s13  ;;  %p1160_p8 = scmp.lt.u32.totalorder %s1156_s13, %s1340_s2 }
0x197e   :  { %p1162_p9 = pnand %p1160_p8, %p1157_p7 }
0x1980   :  { %1165 = shalt.err (!%p1162_p9)
}
0x1981   :  { %s1181_s18 = smov 128   ;;  %s1182_s19 = smov 8  }
0x1982   :  { %955 = dma.vmem_to_hbm [thread:$0]  %s950_s9, 1024, %s1340_s2, [#allocation4], %s1181_s18, %s1181_s18, %s1182_s19  }
0x1983   :  { %1170 = dma.done.wait [#allocation4], 1024  }
0x1984   :  { %1171 = vsyncadd [#allocation4], 4294966272 }
0x1985   :  { %959 = vsyncpa [#allocation3], 1 }
0x1986   :  { %960 = vsyncpa [#allocation6], 1 }
0x1987   :  { %961 = vsyncpa [#allocation4], 1 }

</bundles_post_ra>
